<compile_context>
chip_gen: v7x
topology: tpu7x:2x2x1
jax: 0.10.0
libtpu: 0.0.40
codegen_flags: <defaults>
</compile_context>

<pallas_src>
import jax
import jax.numpy as jnp
from jax.experimental import pallas as pl
from jax.experimental.pallas import tpu as pltpu


# ---------------- helpers ----------------

def _round_up(x, m):
    return ((x + m - 1) // m) * m


def _pad2(x, rows, cols):
    return jnp.pad(x, ((0, rows - x.shape[0]), (0, cols - x.shape[1])))


# ---------------- fused Pallas kernel ----------------

def _hcan_fused_kernel(a_ref, xw_ref, bg_ref, w1_ref, b1_ref, w2_ref, mask_ref,
                       o_ref,
                       agg_scr, mmax_scr, denom_scr):
    """Grid = (M, num_k).  One (m, k) step = one neighbor-chunk of meta-path m.

    a_ref   : (1, n_pad, tk)    k-chunk of normalized adjacency of meta-path m
    xw_ref  : (tk, fo_pad)      k-chunk of precomputed xw = h @ W_gcn
    bg_ref  : (1, fo_pad)       GraphConv bias (applied after aggregation)
    w1_ref  : (fo_pad, fo_pad)  semantic-attn projection
    b1_ref  : (1, fo_pad)
    w2_ref  : (1, fo_pad)       semantic-attn vector (as a lane row)
    mask_ref: (n_pad, 1)        padded-row mask with 1/N folded in
    o_ref   : (n_pad, fo_pad)   resident output / running beta-weighted sum
    agg_scr : (n_pad, fo_pad)   f32 accumulator for A_m @ xw across k chunks
    """
    m = pl.program_id(0)
    k = pl.program_id(1)
    num_m = pl.num_programs(0)
    num_k = pl.num_programs(1)

    # ---- init carries on the very first grid step ----
    @pl.when(jnp.logical_and(m == 0, k == 0))
    def _():
        mmax_scr[...] = jnp.full((1, 1), -1e30, jnp.float32)
        denom_scr[...] = jnp.zeros((1, 1), jnp.float32)
        o_ref[...] = jnp.zeros_like(o_ref)

    # ---- zero the aggregation accumulator at the start of each meta-path ----
    @pl.when(k == 0)
    def _():
        agg_scr[...] = jnp.zeros_like(agg_scr)

    # ---- partial GCN aggregation for this neighbor chunk (MXU, f32 acc) ----
    agg_scr[...] += jnp.dot(a_ref[0], xw_ref[...],
                            preferred_element_type=jnp.float32)

    # ---- last chunk of this meta-path: ELU, score, online softmax update ----
    @pl.when(k == num_k - 1)
    def _():
        agg = agg_scr[...] + bg_ref[...]
        # TODO(synk): switch the negative branch to expm1 once verified in the
        # Mosaic lowering; exp(min(x,0)) - 1 is within f32 tolerance here.
        z = jnp.where(agg > 0, agg, jnp.exp(jnp.minimum(agg, 0.0)) - 1.0)

        # semantic score: rank-1 projection on VPU (w2 is a lane row) + reduce
        proj = jnp.tanh(
            jnp.dot(z.astype(w1_ref.dtype), w1_ref[...],
                    preferred_element_type=jnp.float32) + b1_ref[...])
        s = jnp.sum(proj * w2_ref[...], axis=-1, keepdims=True)   # (n_pad, 1)
        w_m = jnp.sum(s * mask_ref[...], axis=0, keepdims=True)   # (1, 1) mean

        # online softmax over meta-paths; o_ref is the running accumulator
        old_max = mmax_scr[...]
        new_max = jnp.maximum(old_max, w_m)
        scale = jnp.exp(old_max - new_max)
        p = jnp.exp(w_m - new_max)
        denom_scr[...] = denom_scr[...] * scale + p
        o_ref[...] = o_ref[...] * scale + p * z
        mmax_scr[...] = new_max

    # ---- finalize: normalize by the softmax denominator ----
    @pl.when(jnp.logical_and(m == num_m - 1, k == num_k - 1))
    def _():
        o_ref[...] = o_ref[...] * (1.0 / denom_scr[...])


# ---------------- wrapper ----------------

def hcan_single_layer(a_hat, h, w_gcn, b_gcn, w1, b1, w2,
                      *, compute_dtype=jnp.bfloat16):
    """a_hat: (M, N, N) normalized adjacencies, h: (N, F_in) -> (N, F_out)."""
    M, N, _ = a_hat.shape
    F_out = w_gcn.shape[1]

    n_pad = _round_up(N, 128)        # lane-dense node / neighbor axes
    fo_pad = _round_up(F_out, 128)

    # neighbor-axis tile for the A @ xw contraction (divides n_pad)
    tk = 512
    while n_pad % tk != 0:
        tk //= 2
    num_k = n_pad // tk

    # xw = h @ W_gcn hoisted to plain XLA (bias applied after aggregation, as
    # in DGL GraphConv); its HBM traffic is negligible vs the M*N^2 A stream.
    xw = (h @ w_gcn).astype(compute_dtype)

    # Zero-padded, lane-dense operands.  Padded xw rows are zero so padded
    # adjacency columns contribute nothing; padded node rows are masked out of
    # the per-meta-path mean via mask_p and sliced off at the end.
    a_p = jnp.pad(a_hat, ((0, 0), (0, n_pad - N), (0, n_pad - N))
                  ).astype(compute_dtype)
    xw_p = _pad2(xw, n_pad, fo_pad)
    bg_p = _pad2(b_gcn, 1, fo_pad).astype(jnp.float32)
    w1_p = _pad2(w1, fo_pad, fo_pad).astype(compute_dtype)
    b1_p = _pad2(b1, 1, fo_pad).astype(jnp.float32)
    w2_p = _pad2(w2.T, 1, fo_pad).astype(jnp.float32)             # lane row
    mask_p = jnp.where(jnp.arange(n_pad) < N, 1.0 / N, 0.0
                       ).astype(jnp.float32)[:, None]             # (n_pad, 1)

    # VMEM budget from actual block / scratch sizes (double-buffered inputs).
    itemsize = jnp.dtype(compute_dtype).itemsize
    vmem_est = (2 * n_pad * tk * itemsize            # A chunks
                + 2 * tk * fo_pad * itemsize         # xw chunks
                + 2 * fo_pad * fo_pad * itemsize     # W1
                + 2 * n_pad * fo_pad * 4             # resident output
                + n_pad * fo_pad * 4                 # agg accumulator
                + 8 * fo_pad * 4 + 2 * n_pad * 4)    # small vectors
    # TODO(synk): cap near ~56 MiB when targeting v7x (64 MiB physical VMEM),
    # and add a 'parallel' row-tile axis (two-pass combine) for its 2nd core.
    vmem_limit = int(min(max(int(vmem_est * 1.5), 32 * 1024 * 1024),
                         100 * 1024 * 1024))

    # TODO(synk): sweep pipeline depth (pl.Buffered(3)) on the A BlockSpec once
    # measured on hardware; default double-buffering is used here.
    out_p = pl.pallas_call(
        _hcan_fused_kernel,
        grid=(M, num_k),
        in_specs=[
            pl.BlockSpec((1, n_pad, tk), lambda m, k: (m, 0, k)),   # A_hat[m] chunk
            pl.BlockSpec((tk, fo_pad), lambda m, k: (k, 0)),        # xw chunk
            pl.BlockSpec((1, fo_pad), lambda m, k: (0, 0)),         # b_gcn
            pl.BlockSpec((fo_pad, fo_pad), lambda m, k: (0, 0)),    # W1
            pl.BlockSpec((1, fo_pad), lambda m, k: (0, 0)),         # b1
            pl.BlockSpec((1, fo_pad), lambda m, k: (0, 0)),         # w2 row
            pl.BlockSpec((n_pad, 1), lambda m, k: (0, 0)),          # row mask/mean
        ],
        out_specs=pl.BlockSpec((n_pad, fo_pad), lambda m, k: (0, 0)),
        out_shape=jax.ShapeDtypeStruct((n_pad, fo_pad), jnp.float32),
        scratch_shapes=[
            pltpu.VMEM((n_pad, fo_pad), jnp.float32),   # agg = A_m @ xw accumulator
            pltpu.VMEM((1, 1), jnp.float32),            # running max of w_m
            pltpu.VMEM((1, 1), jnp.float32),            # running softmax denom
        ],
        compiler_params=pltpu.CompilerParams(
            dimension_semantics=("arbitrary", "arbitrary"),
            vmem_limit_bytes=vmem_limit,
        ),
    )(a_p, xw_p, bg_p, w1_p, b1_p, w2_p, mask_p)

    return out_p[:N, :F_out]


# ---------------- pure-JAX reference (correctness check) ----------------

def reference(a_hat, h, w_gcn, b_gcn, w1, b1, w2):
    z = jnp.einsum('mij,jf->mif', a_hat, h @ w_gcn) + b_gcn        # GCN + bias
    z = jnp.where(z > 0, z, jnp.expm1(jnp.minimum(z, 0.0)))        # ELU
    s = jnp.einsum('mnd,dk->mnk',
                   jnp.tanh(jnp.einsum('mnd,de->mne', z, w1) + b1), w2)
    w = jnp.mean(s, axis=1)                                        # (M, 1)
    beta = jax.nn.softmax(w, axis=0)                               # (M, 1)
    return jnp.sum(beta[:, None, :] * z, axis=0)                   # (N, D)


# ---------------- driver ----------------

if __name__ == "__main__":
    key = jax.random.PRNGKey(0)
    M = 3            # num_meta_paths
    N = 16           # nodes
    F_IN = 8         # in_size
    F_OUT = 32       # out_size

    k_adj, k_h, k_wg, k_bg, k_w1, k_b1, k_w2 = jax.random.split(key, 7)

    # Build M random symmetric graphs and their normalized adjacencies
    # (A_hat = D^-1/2 A D^-1/2, degrees clamped to >= 1, as in DGL GraphConv).
    raw = jax.random.bernoulli(k_adj, 0.3, (M, N, N)).astype(jnp.float32)
    adj = jnp.maximum(raw, jnp.transpose(raw, (0, 2, 1)))
    deg = jnp.maximum(adj.sum(axis=2), 1.0)
    dinv = deg ** -0.5
    a_hat = dinv[:, :, None] * adj * dinv[:, None, :]

    h = jax.random.normal(k_h, (N, F_IN), jnp.float32)

    # Deterministic synthetic parameters (module __init__ shapes).
    w_gcn = 0.2 * jax.random.normal(k_wg, (F_IN, F_OUT), jnp.float32)    # GraphConv weight
    b_gcn = 0.1 * jax.random.normal(k_bg, (1, F_OUT), jnp.float32)       # GraphConv bias
    w1 = 0.2 * jax.random.normal(k_w1, (F_OUT, F_OUT), jnp.float32)      # Linear(out, out)
    b1 = 0.1 * jax.random.normal(k_b1, (1, F_OUT), jnp.float32)
    w2 = 0.2 * jax.random.normal(k_w2, (F_OUT, 1), jnp.float32)          # Linear(out, 1, bias=False)

    ref = reference(a_hat, h, w_gcn, b_gcn, w1, b1, w2)

    # f32 path: strict check against the reference.
    out_f32 = hcan_single_layer(a_hat, h, w_gcn, b_gcn, w1, b1, w2,
                                compute_dtype=jnp.float32)
    out_f32 = jax.block_until_ready(out_f32)
    assert out_f32.shape == (N, F_OUT)
    assert jnp.allclose(out_f32, ref, atol=1e-4, rtol=1e-4), "f32 mismatch vs reference"

    # Default bf16 MXU operands with f32 accumulation: looser tolerance.
    out_bf16 = hcan_single_layer(a_hat, h, w_gcn, b_gcn, w1, b1, w2)
    out_bf16 = jax.block_until_ready(out_bf16)
    assert out_bf16.shape == (N, F_OUT)
    assert jnp.allclose(out_bf16, ref, atol=5e-2, rtol=5e-2), "bf16 mismatch vs reference"

    print("KERNEL_OK")
</pallas_src>

<mosaic_0001>
module attributes {stable_mosaic.version = 11 : i64} {
  func.func @_hcan_fused_kernel(%arg0: i32, %arg1: i32, %arg2: memref<1x128x128xf32, #tpu.memory_space<vmem>>, %arg3: memref<128x128xf32, #tpu.memory_space<vmem>>, %arg4: memref<1x128xf32, #tpu.memory_space<vmem>>, %arg5: memref<128x128xf32, #tpu.memory_space<vmem>>, %arg6: memref<1x128xf32, #tpu.memory_space<vmem>>, %arg7: memref<1x128xf32, #tpu.memory_space<vmem>>, %arg8: memref<128x1xf32, #tpu.memory_space<vmem>>, %arg9: memref<128x128xf32, #tpu.memory_space<vmem>>, %arg10: memref<128x128xf32, #tpu.memory_space<vmem>>, %arg11: memref<1x1xf32, #tpu.memory_space<vmem>>, %arg12: memref<1x1xf32, #tpu.memory_space<vmem>>) attributes {dimension_semantics = [#tpu.dimension_semantics<arbitrary>, #tpu.dimension_semantics<arbitrary>], iteration_bounds = array<i64: 3, 1>, scalar_prefetch = 0 : i64, scratch_operands = 3 : i64, tpu.core_type = #tpu.core_type<tc>, window_params = [{transform_indices = @transform_0, window_bounds = array<i64: 1, 128, 128>}, {transform_indices = @transform_1, window_bounds = array<i64: 128, 128>}, {pipeline_mode = #tpu.pipeline_mode<synchronous>, transform_indices = @transform_2, window_bounds = array<i64: 1, 128>}, {pipeline_mode = #tpu.pipeline_mode<synchronous>, transform_indices = @transform_3, window_bounds = array<i64: 128, 128>}, {pipeline_mode = #tpu.pipeline_mode<synchronous>, transform_indices = @transform_4, window_bounds = array<i64: 1, 128>}, {pipeline_mode = #tpu.pipeline_mode<synchronous>, transform_indices = @transform_5, window_bounds = array<i64: 1, 128>}, {pipeline_mode = #tpu.pipeline_mode<synchronous>, transform_indices = @transform_6, window_bounds = array<i64: 128, 1>}, {pipeline_mode = #tpu.pipeline_mode<synchronous>, transform_indices = @transform_7, window_bounds = array<i64: 128, 128>}]} {
    %c0_i32 = arith.constant 0 : i32
    %0 = arith.cmpi eq, %arg0, %c0_i32 : i32
    %c0_i32_0 = arith.constant 0 : i32
    %1 = arith.cmpi eq, %arg1, %c0_i32_0 : i32
    %2 = arith.andi %0, %1 : i1
    %3 = arith.extui %2 : i1 to i32
    %c0_i32_1 = arith.constant 0 : i32
    %4 = arith.cmpi ne, %3, %c0_i32_1 : i32
    scf.if %4 {
      %cst_16 = arith.constant -1.000000e+30 : f32
      %23 = vector.broadcast %cst_16 : f32 to vector<1x1xf32>
      %c0_17 = arith.constant 0 : index
      %c0_18 = arith.constant 0 : index
      %24 = vector.load %arg11[%c0_17, %c0_18] : memref<1x1xf32, #tpu.memory_space<vmem>>, vector<1x1xf32>
      tpu.vector_store %arg11[%c0_17, %c0_18], %23 {strides = array<i32>} : memref<1x1xf32, #tpu.memory_space<vmem>>, vector<1x1xf32>,
      %cst_19 = arith.constant 0.000000e+00 : f32
      %25 = vector.broadcast %cst_19 : f32 to vector<1x1xf32>
      %c0_20 = arith.constant 0 : index
      %c0_21 = arith.constant 0 : index
      %26 = vector.load %arg12[%c0_20, %c0_21] : memref<1x1xf32, #tpu.memory_space<vmem>>, vector<1x1xf32>
      tpu.vector_store %arg12[%c0_20, %c0_21], %25 {strides = array<i32>} : memref<1x1xf32, #tpu.memory_space<vmem>>, vector<1x1xf32>,
      %cst_22 = arith.constant 0.000000e+00 : f32
      %27 = vector.broadcast %cst_22 : f32 to vector<128x128xf32>
      %c0_23 = arith.constant 0 : index
      %c0_24 = arith.constant 0 : index
      %28 = vector.load %arg9[%c0_23, %c0_24] : memref<128x128xf32, #tpu.memory_space<vmem>>, vector<128x128xf32>
      tpu.vector_store %arg9[%c0_23, %c0_24], %27 {strides = array<i32>} : memref<128x128xf32, #tpu.memory_space<vmem>>, vector<128x128xf32>,
    } else {
    }
    %c0_i32_2 = arith.constant 0 : i32
    %5 = arith.cmpi eq, %arg1, %c0_i32_2 : i32
    %6 = arith.extui %5 : i1 to i32
    %c0_i32_3 = arith.constant 0 : i32
    %7 = arith.cmpi ne, %6, %c0_i32_3 : i32
    scf.if %7 {
      %cst_16 = arith.constant 0.000000e+00 : f32
      %23 = vector.broadcast %cst_16 : f32 to vector<128x128xf32>
      %c0_17 = arith.constant 0 : index
      %c0_18 = arith.constant 0 : index
      %24 = vector.load %arg10[%c0_17, %c0_18] : memref<128x128xf32, #tpu.memory_space<vmem>>, vector<128x128xf32>
      tpu.vector_store %arg10[%c0_17, %c0_18], %23 {strides = array<i32>} : memref<128x128xf32, #tpu.memory_space<vmem>>, vector<128x128xf32>,
    } else {
    }
    %c0 = arith.constant 0 : index
    %c0_4 = arith.constant 0 : index
    %8 = vector.load %arg10[%c0, %c0_4] : memref<128x128xf32, #tpu.memory_space<vmem>>, vector<128x128xf32>
    %c0_5 = arith.constant 0 : index
    %c0_6 = arith.constant 0 : index
    %c0_7 = arith.constant 0 : index
    %9 = vector.load %arg2[%c0_5, %c0_6, %c0_7] : memref<1x128x128xf32, #tpu.memory_space<vmem>>, vector<1x128x128xf32>
    %10 = vector.shape_cast %9 : vector<1x128x128xf32> to vector<128x128xf32>
    %c0_8 = arith.constant 0 : index
    %c0_9 = arith.constant 0 : index
    %11 = vector.load %arg3[%c0_8, %c0_9] : memref<128x128xf32, #tpu.memory_space<vmem>>, vector<128x128xf32>
    %cst = arith.constant dense<0.000000e+00> : vector<128x128xf32>
    %12 = tpu.matmul %10, %11, %cst {dimension_numbers = #tpu.dot_dimension_numbers<[1], [0], [0], [1], [0, 0, 1, 1], [], []>} : vector<128x128xf32>, vector<128x128xf32>, vector<128x128xf32> -> vector<128x128xf32>
    %13 = arith.addf %8, %12 : vector<128x128xf32>
    %c0_10 = arith.constant 0 : index
    %c0_11 = arith.constant 0 : index
    %14 = vector.load %arg10[%c0_10, %c0_11] : memref<128x128xf32, #tpu.memory_space<vmem>>, vector<128x128xf32>
    tpu.vector_store %arg10[%c0_10, %c0_11], %13 {strides = array<i32>} : memref<128x128xf32, #tpu.memory_space<vmem>>, vector<128x128xf32>,
    %c0_i32_12 = arith.constant 0 : i32
    %15 = arith.cmpi eq, %arg1, %c0_i32_12 : i32
    %16 = arith.extui %15 : i1 to i32
    %c0_i32_13 = arith.constant 0 : i32
    %17 = arith.cmpi ne, %16, %c0_i32_13 : i32
    scf.if %17 {
      %c0_16 = arith.constant 0 : index
      %c0_17 = arith.constant 0 : index
      %23 = vector.load %arg10[%c0_16, %c0_17] : memref<128x128xf32, #tpu.memory_space<vmem>>, vector<128x128xf32>
      %c0_18 = arith.constant 0 : index
      %c0_19 = arith.constant 0 : index
      %24 = vector.load %arg4[%c0_18, %c0_19] : memref<1x128xf32, #tpu.memory_space<vmem>>, vector<1x128xf32>
      %25 = vector.broadcast %24 : vector<1x128xf32> to vector<128x128xf32>
      %26 = arith.addf %23, %25 : vector<128x128xf32>
      %cst_20 = arith.constant 0.000000e+00 : f32
      %27 = vector.broadcast %cst_20 : f32 to vector<128x128xf32>
      %28 = arith.cmpf ogt, %26, %27 : vector<128x128xf32>
      %cst_21 = arith.constant 0.000000e+00 : f32
      %29 = vector.broadcast %cst_21 : f32 to vector<128x128xf32>
      %30 = arith.minimumf %26, %29 : vector<128x128xf32>
      %31 = math.exp %30 : vector<128x128xf32>
      %cst_22 = arith.constant 1.000000e+00 : f32
      %32 = vector.broadcast %cst_22 : f32 to vector<128x128xf32>
      %33 = arith.subf %31, %32 : vector<128x128xf32>
      %34 = arith.select %28, %26, %33 : vector<128x128xi1>, vector<128x128xf32>
      %c0_23 = arith.constant 0 : index
      %c0_24 = arith.constant 0 : index
      %35 = vector.load %arg5[%c0_23, %c0_24] : memref<128x128xf32, #tpu.memory_space<vmem>>, vector<128x128xf32>
      %cst_25 = arith.constant dense<0.000000e+00> : vector<128x128xf32>
      %36 = tpu.matmul %34, %35, %cst_25 {dimension_numbers = #tpu.dot_dimension_numbers<[1], [0], [0], [1], [0, 0, 1, 1], [], []>} : vector<128x128xf32>, vector<128x128xf32>, vector<128x128xf32> -> vector<128x128xf32>
      %c0_26 = arith.constant 0 : index
      %c0_27 = arith.constant 0 : index
      %37 = vector.load %arg6[%c0_26, %c0_27] : memref<1x128xf32, #tpu.memory_space<vmem>>, vector<1x128xf32>
      %38 = vector.broadcast %37 : vector<1x128xf32> to vector<128x128xf32>
      %39 = arith.addf %36, %38 : vector<128x128xf32>
      %40 = math.tanh %39 : vector<128x128xf32>
      %c0_28 = arith.constant 0 : index
      %c0_29 = arith.constant 0 : index
      %41 = vector.load %arg7[%c0_28, %c0_29] : memref<1x128xf32, #tpu.memory_space<vmem>>, vector<1x128xf32>
      %42 = vector.broadcast %41 : vector<1x128xf32> to vector<128x128xf32>
      %43 = arith.mulf %40, %42 : vector<128x128xf32>
      %cst_30 = arith.constant dense<0.000000e+00> : vector<128xf32>
      %44 = vector.multi_reduction <add>, %43, %cst_30 [1] : vector<128x128xf32> to vector<128xf32>
      %45 = vector.shape_cast %44 : vector<128xf32> to vector<128x1xf32>
      %c0_31 = arith.constant 0 : index
      %c0_32 = arith.constant 0 : index
      %46 = vector.load %arg8[%c0_31, %c0_32] : memref<128x1xf32, #tpu.memory_space<vmem>>, vector<128x1xf32>
      %47 = arith.mulf %45, %46 : vector<128x1xf32>
      %cst_33 = arith.constant dense<0.000000e+00> : vector<1xf32>
      %48 = vector.multi_reduction <add>, %47, %cst_33 [0] : vector<128x1xf32> to vector<1xf32>
      %49 = vector.shape_cast %48 : vector<1xf32> to vector<1x1xf32>
      %c0_34 = arith.constant 0 : index
      %c0_35 = arith.constant 0 : index
      %50 = vector.load %arg11[%c0_34, %c0_35] : memref<1x1xf32, #tpu.memory_space<vmem>>, vector<1x1xf32>
      %51 = arith.maximumf %50, %49 : vector<1x1xf32>
      %52 = arith.subf %50, %51 : vector<1x1xf32>
      %53 = math.exp %52 : vector<1x1xf32>
      %54 = arith.subf %49, %51 : vector<1x1xf32>
      %55 = math.exp %54 : vector<1x1xf32>
      %c0_36 = arith.constant 0 : index
      %c0_37 = arith.constant 0 : index
      %56 = vector.load %arg12[%c0_36, %c0_37] : memref<1x1xf32, #tpu.memory_space<vmem>>, vector<1x1xf32>
      %57 = arith.mulf %56, %53 : vector<1x1xf32>
      %58 = arith.addf %57, %55 : vector<1x1xf32>
      %c0_38 = arith.constant 0 : index
      %c0_39 = arith.constant 0 : index
      %59 = vector.load %arg12[%c0_38, %c0_39] : memref<1x1xf32, #tpu.memory_space<vmem>>, vector<1x1xf32>
      tpu.vector_store %arg12[%c0_38, %c0_39], %58 {strides = array<i32>} : memref<1x1xf32, #tpu.memory_space<vmem>>, vector<1x1xf32>,
      %c0_40 = arith.constant 0 : index
      %c0_41 = arith.constant 0 : index
      %60 = vector.load %arg9[%c0_40, %c0_41] : memref<128x128xf32, #tpu.memory_space<vmem>>, vector<128x128xf32>
      %61 = vector.broadcast %53 : vector<1x1xf32> to vector<128x128xf32>
      %62 = arith.mulf %60, %61 : vector<128x128xf32>
      %63 = vector.broadcast %55 : vector<1x1xf32> to vector<128x128xf32>
      %64 = arith.mulf %63, %34 : vector<128x128xf32>
      %65 = arith.addf %62, %64 : vector<128x128xf32>
      %c0_42 = arith.constant 0 : index
      %c0_43 = arith.constant 0 : index
      %66 = vector.load %arg9[%c0_42, %c0_43] : memref<128x128xf32, #tpu.memory_space<vmem>>, vector<128x128xf32>
      tpu.vector_store %arg9[%c0_42, %c0_43], %65 {strides = array<i32>} : memref<128x128xf32, #tpu.memory_space<vmem>>, vector<128x128xf32>,
      %c0_44 = arith.constant 0 : index
      %c0_45 = arith.constant 0 : index
      %67 = vector.load %arg11[%c0_44, %c0_45] : memref<1x1xf32, #tpu.memory_space<vmem>>, vector<1x1xf32>
      tpu.vector_store %arg11[%c0_44, %c0_45], %51 {strides = array<i32>} : memref<1x1xf32, #tpu.memory_space<vmem>>, vector<1x1xf32>,
    } else {
    }
    %c2_i32 = arith.constant 2 : i32
    %18 = arith.cmpi eq, %arg0, %c2_i32 : i32
    %c0_i32_14 = arith.constant 0 : i32
    %19 = arith.cmpi eq, %arg1, %c0_i32_14 : i32
    %20 = arith.andi %18, %19 : i1
    %21 = arith.extui %20 : i1 to i32
    %c0_i32_15 = arith.constant 0 : i32
    %22 = arith.cmpi ne, %21, %c0_i32_15 : i32
    scf.if %22 {
      %c0_16 = arith.constant 0 : index
      %c0_17 = arith.constant 0 : index
      %23 = vector.load %arg9[%c0_16, %c0_17] : memref<128x128xf32, #tpu.memory_space<vmem>>, vector<128x128xf32>
      %c0_18 = arith.constant 0 : index
      %c0_19 = arith.constant 0 : index
      %24 = vector.load %arg12[%c0_18, %c0_19] : memref<1x1xf32, #tpu.memory_space<vmem>>, vector<1x1xf32>
      %cst_20 = arith.constant 1.000000e+00 : f32
      %25 = vector.broadcast %cst_20 : f32 to vector<1x1xf32>
      %26 = arith.divf %25, %24 : vector<1x1xf32>
      %27 = vector.broadcast %26 : vector<1x1xf32> to vector<128x128xf32>
      %28 = arith.mulf %23, %27 : vector<128x128xf32>
      %c0_21 = arith.constant 0 : index
      %c0_22 = arith.constant 0 : index
      %29 = vector.load %arg9[%c0_21, %c0_22] : memref<128x128xf32, #tpu.memory_space<vmem>>, vector<128x128xf32>
      tpu.vector_store %arg9[%c0_21, %c0_22], %28 {strides = array<i32>} : memref<128x128xf32, #tpu.memory_space<vmem>>, vector<128x128xf32>,
    } else {
    }
    return
  }
  func.func @transform_0(%arg0: i32, %arg1: i32) -> (i32, i32, i32) {
    %c0_i32 = arith.constant 0 : i32
    %c0_i32_0 = arith.constant 0 : i32
    return %arg0, %c0_i32, %arg1 : i32, i32, i32
  }
  func.func @transform_1(%arg0: i32, %arg1: i32) -> (i32, i32) {
    %c0_i32 = arith.constant 0 : i32
    %c0_i32_0 = arith.constant 0 : i32
    return %arg1, %c0_i32 : i32, i32
  }
  func.func @transform_2(%arg0: i32, %arg1: i32) -> (i32, i32) {
    %c0_i32 = arith.constant 0 : i32
    %c0_i32_0 = arith.constant 0 : i32
    %c0_i32_1 = arith.constant 0 : i32
    return %c0_i32, %c0_i32_0 : i32, i32
  }
  func.func @transform_3(%arg0: i32, %arg1: i32) -> (i32, i32) {
    %c0_i32 = arith.constant 0 : i32
    %c0_i32_0 = arith.constant 0 : i32
    %c0_i32_1 = arith.constant 0 : i32
    return %c0_i32, %c0_i32_0 : i32, i32
  }
  func.func @transform_4(%arg0: i32, %arg1: i32) -> (i32, i32) {
    %c0_i32 = arith.constant 0 : i32
    %c0_i32_0 = arith.constant 0 : i32
    %c0_i32_1 = arith.constant 0 : i32
    return %c0_i32, %c0_i32_0 : i32, i32
  }
  func.func @transform_5(%arg0: i32, %arg1: i32) -> (i32, i32) {
    %c0_i32 = arith.constant 0 : i32
    %c0_i32_0 = arith.constant 0 : i32
    %c0_i32_1 = arith.constant 0 : i32
    return %c0_i32, %c0_i32_0 : i32, i32
  }
  func.func @transform_6(%arg0: i32, %arg1: i32) -> (i32, i32) {
    %c0_i32 = arith.constant 0 : i32
    %c0_i32_0 = arith.constant 0 : i32
    %c0_i32_1 = arith.constant 0 : i32
    return %c0_i32, %c0_i32_0 : i32, i32
  }
  func.func @transform_7(%arg0: i32, %arg1: i32) -> (i32, i32) {
    %c0_i32 = arith.constant 0 : i32
    %c0_i32_0 = arith.constant 0 : i32
    %c0_i32_1 = arith.constant 0 : i32
    return %c0_i32, %c0_i32_0 : i32, i32
  }
}

</mosaic_0001>

<bundles_post_ra>
// kernel: tpu_custom_call.1
= control target key start
LH: loop header
LB: loop body
LE: loop exit
PB: predicated region body
PF: predicated region fallthrough
CT: control target
= control target key end

     0   :  { %12 = vsyncpa [#allocation6], 0  ;;  %s2473_s0 = inlined_call_operand.hbm [shape: f32[3,128,128], index: 0, kind: input, shape index: {}]   ;;  %s2474_s1 = inlined_call_operand.vmem [shape: f32[128,128], index: 1, kind: input, shape index: {}]   ;;  %s2475_s2 = inlined_call_operand.vmem [shape: f32[1,128], index: 2, kind: input, shape index: {}]   ;;  %s2476_s3 = inlined_call_operand.hbm [shape: f32[128,128], index: 3, kind: input, shape index: {}]   ;;  %s2477_s4 = inlined_call_operand.vmem [shape: f32[1,128], index: 4, kind: input, shape index: {}]   ;;  %s2478_s5 = inlined_call_operand.vmem [shape: f32[1,128], index: 5, kind: input, shape index: {}]   ;;  %s2479_s6 = inlined_call_operand.vmem [shape: f32[128,1], index: 6, kind: input, shape index: {}]   ;;  %s2480_s7 = inlined_call_operand.hbm [shape: f32[128,128], index: 7, kind: output, shape index: {}]  }
   0x1   :  { %14 = vsyncpa [#allocation6 + $0x1], 0 }
   0x2   :  { %15 = vsyncpa [#allocation9], 0 }
   0x3   :  { %16 = vsyncpa [#allocation7], 0  ;;  %s1949_s24 = smov 0   ;;  %s1951_s25 = smov 0  }
   0x4   :  { %s1953_s26 = smov 0   ;;  %s1955_s27 = smov 0  }
   0x5   :  { %s1957_s28 = smov 0   ;;  %s1959_s29 = smov 0  }
   0x6 LB: > { %s2485_s30 = sadd.s32 4294967295, %s1896_s29   ;;  %p56_p0 = scmp.ne.s32.totalorder %s1880_s25, %s1876_s24  ;;  %s1896_s29 = sphi %s1959_s29, %s22_s29   ;;  %s1892_s28 = sphi %s1957_s28, %s2500_s28   ;;  %s1888_s27 = sphi %s1955_s27, %s2499_s27   ;;  %s1884_s26 = sphi %s1953_s26, %s2498_s26   ;;  %s1880_s25 = sphi %s1951_s25, %s2497_s25   ;;  %s1876_s24 = sphi %s1949_s24, %s2496_s24  }
   0x7   : > { %p1981_p1 = scmp.eq.s32.totalorder %s2485_s30, 0  ;;  %p1321_p2 = scmp.ge.s32.totalorder %s1896_s29, 1 }
   0x8   : > { %p219_p3 = scmp.lt.s32.totalorder %s1896_s29, 4  ;;  %s1898_s11 = smov [#allocation8]  }
   0x9   : > { %s2486_s8 = scalar_select %p1981_p1, 1, 0 }
   0xa   : > { %p1989_p4 = por %p1981_p1, %p56_p0  ;;  %p1993_p5 = pnand %p1321_p2, %p219_p3 }
   0xb   : > { %s243_s12 = sshll.u32 %s1898_s11, 4  ;;  %s34_s14 = sadd.s32 1, %s1892_s28  ;;  %s244_s12 = int_to_ptr.vmem [resolvable:$true] %s243_s12 }
   0xc   : > { %s2487_s9 = scalar_select %p1989_p4, 1, 0 }
   0xd   : > { %s2488_s10 = scalar_select %p1993_p5, 1, 0 }
   0xe   : > { %p1611_p6 = pneg %p1993_p5  ;;  %s1754_s17 = scalar_lea.hbm %s2476_s3, 2048 }
   0xf   : > { %p1755_p8 = scmp.ne.s32.totalorder %s2476_s3, %s1754_s17  ;;  %p1761_p12 = scmp.lt.u32.totalorder %s1754_s17, %s2476_s3 }
  0x10   : > { %p2001_p7 = pnand %p1611_p6, %p1981_p1 }
  0x12   : > { %p1756_p9 = pneg %p2001_p7 }
  0x14   : > { %p1757_p10 = pnand %p1756_p9, %p1755_p8 }
  0x16   : > { %p1758_p11 = pneg %p1757_p10 }
  0x18   : > { %p1763_p13 = pnand %p1761_p12, %p1758_p11 }
  0x1a   : > { %1766 = shalt.err (!%p1763_p13)
}
  0x1b   : > { %s1767_s22 = scalar_lea.vmem %s244_s12, 2048  ;;  %p1775_p6 = scmp.lt.s32.totalorder %s244_s12, %s244_s12 }
  0x1c   : > { %p1768_p0 = scmp.ne.s32.totalorder %s244_s12, %s1767_s22  ;;  %p1776_p1 = scmp.lt.s32.totalorder %s1767_s22, %s1767_s22 }
  0x1e   : > { %p1770_p2 = pnand %p1768_p0, %p1756_p9  ;;  %p1777_p4 = por %p1776_p1, %p1775_p6 }
  0x20   : > { %p1771_p3 = pneg %p1770_p2 }
  0x22   : > { %p1778_p5 = pnand %p1777_p4, %p1771_p3 }
  0x24   : > { %1781 = shalt.err (!%p1778_p5)
}
  0x25   : > { %s1899_s23 = smov 128   ;;  %s1900_s24 = smov 8  }
  0x26   : > { %1614 = dma.hbm_to_vmem [thread:$0]  (!%p2001_p7), %s2476_s3, 2048, %s244_s12, [#allocation9], %s1899_s23, %s1899_s23, %s1900_s24  }
  0x27   : > { %p36_p1 = scmp.ge.s32.totalorder %s34_s14, 3  ;;  %s43_s16 = sadd.s32 1, %s1884_s26 }
  0x28   : > { %p50_p4 = scmp.ne.s32.totalorder %s1884_s26, %s1880_s25  ;;  %p51_p5 = scmp.eq.s32.totalorder %s1896_s29, 0 }
  0x29   : > { %s2502_s14 = smov (%p36_p1, %s34_s14), 0  ;;  %p1620_p9 = scmp.lt.s32.totalorder %s1896_s29, 3 }
  0x2a   : > { %p52_p8 = por %p51_p5, %p50_p4  ;;  %s38_s17 = ssub.s32 %s1892_s28, %s2502_s14 }
  0x2b   : > { %s266_s18 = sand.u32 1, %s1884_s26   ;;  %p41_p10 = scmp.eq.s32.totalorder %s38_s17, 0 }
  0x2c   : > { %s1325_s13 = sshll.u32 %s266_s18, 7  ;;  %s1356_s19 = sshll.u32 %s1892_s28, 11 }
  0x2d   : > { %s2037_s20 = scalar_select %p41_p10, %s1884_s26, %s43_s16  }
  0x2e   : > { %s2042_s12 = scalar_lea.hbm %s2473_s0, %s1356_s19  ;;  %s270_s11 = scalar_lea.vmem [#allocation5], %s1325_s13 }
  0x2f   : > { %s278_s15 = sshll.u32 %s270_s11, 4  ;;  %p2044_p7 = pnand %p1620_p9, %p52_p8  ;;  %s2048_s15 = int_to_ptr.vmem [resolvable:$true] %s278_s15 }
  0x30   : > { %s2050_s16 = scalar_lea.sflag [#allocation6], %s266_s18  ;;  %s1782_s17 = scalar_lea.hbm %s2042_s12, 2048 }
  0x31   : > { %p1783_p11 = scmp.ne.s32.totalorder %s2042_s12, %s1782_s17  ;;  %p1784_p12 = pneg %p2044_p7 }
  0x32   : > { %s1787_s21 = scalar_lea.hbm %s2473_s0, 6144  ;;  %p1788_p2 = scmp.lt.u32.totalorder %s2042_s12, %s2473_s0 }
  0x33   : > { %p1785_p13 = pnand %p1784_p12, %p1783_p11  ;;  %p1789_p3 = scmp.lt.u32.totalorder %s1787_s21, %s1782_s17 }
  0x34   : > { %p1791_p1 = scmp.lt.u32.totalorder %s1782_s17, %s2042_s12 }
  0x35   : > { %p1786_p0 = pneg %p1785_p13  ;;  %p1790_p6 = por %p1789_p3, %p1788_p2 }
  0x37   : > { %p1792_p4 = por %p1791_p1, %p1790_p6 }
  0x39   : > { %p1793_p5 = pnand %p1792_p4, %p1786_p0 }
  0x3b   : > { %1796 = shalt.err (!%p1793_p5)
}
  0x3c   : > { %s1797_s18 = scalar_lea.vmem %s2048_s15, 2048  ;;  %s1901_s13 = smov [#allocation5]  }
  0x3d   : > { %p1798_p8 = scmp.ne.s32.totalorder %s2048_s15, %s1797_s18  ;;  %s1802_s19 = sshll.u32 %s1901_s13, 4  ;;  %s1803_s19 = int_to_ptr.vmem [resolvable:$false] %s1802_s19 }
  0x3e   : > { %s1804_s22 = scalar_lea.vmem %s1803_s19, 4096  ;;  %p1805_p11 = scmp.lt.s32.totalorder %s2048_s15, %s1803_s19 }
  0x3f   : > { %p1800_p9 = pnand %p1798_p8, %p1784_p12  ;;  %p1806_p13 = scmp.lt.s32.totalorder %s1804_s22, %s1797_s18 }
  0x41   : > { %p1801_p10 = pneg %p1800_p9  ;;  %p1807_p2 = por %p1806_p13, %p1805_p11 }
  0x43   : > { %p1808_p3 = pnand %p1807_p2, %p1801_p10 }
  0x45   : > { %1811 = shalt.err (!%p1808_p3)
}
  0x46   : > { %1618 = dma.hbm_to_vmem [thread:$0]  (!%p2044_p7), %s2042_s12, 2048, %s2048_s15, %s2050_s16, %s1899_s23, %s1899_s23, %s1900_s24  }
  0x47   : > { %p2491_p12 = scmp.ne.s32.totalorder %s2488_s10, 0 }
  0x48   : > { %s292_s17 = sand.u32 (!%p2491_p12), 1, %s1880_s25   ;;  %p2492_p0 = scmp.ne.s32.totalorder (!%p2491_p12), %s2487_s9, 0 }
  0x49   : > { %290 = sbr.rel (%p2491_p12) target bundleno = 1117 (0x45d), region = 48  ;;  %s1329_s21 = sshll.u32 (!%p2491_p12), %s292_s17, 7 }
  0x4a   : > { %s293_s11 = scalar_lea.sflag (!%p2491_p12), [#allocation6], %s292_s17  ;;  %s2084_s18 = scalar_lea.vmem (!%p2491_p12), [#allocation5], %s1329_s21 }
  0x50   : > { %1863 = dma.done.wait (%p2492_p0), %s293_s11, 2048  }
  0x51   : > { %1865 = vsyncadd (%p2492_p0), %s293_s11, 4294965248  ;;  %p2493_p6 = scmp.ne.s32.totalorder %s2486_s8, 0 }
  0x53   : > { %1867 = dma.done.wait (%p2493_p6), [#allocation9], 2048  }
  0x54   : > { %1869 = vsyncadd (%p2493_p6), [#allocation9], 4294965248  ;;  %p337_p7 = scmp.eq.s32.totalorder %s1888_s27, 0 }
  0x55   : > { %vm343_vm0 = vcmask (%p337_p7), 0   ;;  %v1902_v0 = vmov (%p337_p7), -1e+30   ;;  %v1903_v1 = vmov (%p337_p7), 0.0  }
  0x56   : > { %342 = sbr.rel (!%p337_p7) target bundleno = 95 (0x5f), region = 60  ;;  %344 = vst.msk [vmem:[#allocation3] sm:$0x1] (%p337_p7), %vm343_vm0, %v1902_v0  ;;  %345 = vst.msk [vmem:[#allocation4] sm:$0x1] (%p337_p7), %vm343_vm0, %v1903_v1 }
  0x57   : > { %346 = vst [vmem:[#allocation10] sm:$0xff] (%p337_p7), %v1903_v1  ;;  %347 = vst [vmem:[#allocation10 + $0x8] sm:$0xff] (%p337_p7), %v1903_v1 }
  0x58   : > { %348 = vst [vmem:[#allocation10 + $0x10] sm:$0xff] (%p337_p7), %v1903_v1  ;;  %349 = vst [vmem:[#allocation10 + $0x18] sm:$0xff] (%p337_p7), %v1903_v1 }
  0x59   : > { %350 = vst [vmem:[#allocation10 + $0x20] sm:$0xff] (%p337_p7), %v1903_v1  ;;  %351 = vst [vmem:[#allocation10 + $0x28] sm:$0xff] (%p337_p7), %v1903_v1 }
  0x5a   : > { %352 = vst [vmem:[#allocation10 + $0x30] sm:$0xff] (%p337_p7), %v1903_v1  ;;  %353 = vst [vmem:[#allocation10 + $0x38] sm:$0xff] (%p337_p7), %v1903_v1 }
  0x5b   : > { %354 = vst [vmem:[#allocation10 + $0x40] sm:$0xff] (%p337_p7), %v1903_v1  ;;  %355 = vst [vmem:[#allocation10 + $0x48] sm:$0xff] (%p337_p7), %v1903_v1 }
  0x5c   : > { %356 = vst [vmem:[#allocation10 + $0x50] sm:$0xff] (%p337_p7), %v1903_v1  ;;  %357 = vst [vmem:[#allocation10 + $0x58] sm:$0xff] (%p337_p7), %v1903_v1 }
  0x5d   : > { %358 = vst [vmem:[#allocation10 + $0x60] sm:$0xff] %v1903_v1  ;;  %359 = vst [vmem:[#allocation10 + $0x68] sm:$0xff] %v1903_v1 }
  0x5e   : > { %360 = vst [vmem:[#allocation10 + $0x70] sm:$0xff] %v1903_v1  ;;  %361 = vst [vmem:[#allocation10 + $0x78] sm:$0xff] %v1903_v1 }
  0x5f PF: > { %v413_v2 = vld [vmem:[%s2474_s1] sm:$0xff]  ;;  %v414_v3 = vld [vmem:[%s2474_s1 + $0x8] sm:$0xff]  ;;  %v415_v4 = vld [vmem:[%s2474_s1 + $0x10] sm:$0xff]  ;;  %p1160_p1 = scmp.eq.s32.totalorder %s1888_s27, 2 }
  0x60   : > { %v1535_v5 = vpack.c.bf16 %v414_v3, %v413_v2  ;;  %v416_v6 = vld [vmem:[%s2474_s1 + $0x18] sm:$0xff]  ;;  %v417_v8 = vld [vmem:[%s2474_s1 + $0x20] sm:$0xff]  ;;  %v418_v9 = vld [vmem:[%s2474_s1 + $0x28] sm:$0xff] }
  0x61   : > { %v1539_v7 = vpack.c.bf16 %v416_v6, %v415_v4  ;;  %v1543_v10 = vpack.c.bf16 %v418_v9, %v417_v8  ;;  %v397_v11 = vld [vmem:[%s2084_s18] sm:$0xff]  ;;  %v419_v12 = vld [vmem:[%s2474_s1 + $0x30] sm:$0xff]  ;;  %v420_v13 = vld [vmem:[%s2474_s1 + $0x38] sm:$0xff] }
  0x62   : > { %1536 = vmatprep.subr.bf16.mxu0 %v1535_v5  ;;  %1455 = vmatprep.mubr.f32.mxu0 %v397_v11  ;;  %v1547_v14 = vpack.c.bf16 %v420_v13, %v419_v12  ;;  %v421_v15 = vld [vmem:[%s2474_s1 + $0x40] sm:$0xff]  ;;  %v422_v16 = vld [vmem:[%s2474_s1 + $0x48] sm:$0xff]  ;;  %v746_v19 = vld [vmem:[#allocation8 + $0x10] sm:$0xff] }
  0x63   : > { %1538 = vmatpush3.bf16.msra.mxu0 %v1535_v5  ;;  %v744_v17 = vld [vmem:[#allocation8] sm:$0xff]  ;;  %v745_v18 = vld [vmem:[#allocation8 + $0x8] sm:$0xff]  ;;  %v747_v20 = vld [vmem:[#allocation8 + $0x18] sm:$0xff]  ;;  %v1551_v23 = vpack.c.bf16 %v422_v16, %v421_v15 }
  0x64   : > { %1540 = vmatprep.subr.bf16.mxu0 %v1539_v7  ;;  %v1567_v21 = vpack.c.bf16 %v745_v18, %v744_v17  ;;  %v1571_v22 = vpack.c.bf16 %v747_v20, %v746_v19  ;;  %v748_v24 = vld [vmem:[#allocation8 + $0x20] sm:$0xff]  ;;  %v749_v25 = vld [vmem:[#allocation8 + $0x28] sm:$0xff]  ;;  %v424_v27 = vld [vmem:[%s2474_s1 + $0x58] sm:$0xff] }
  0x65   : > { %v423_v26 = vld [vmem:[%s2474_s1 + $0x50] sm:$0xff]  ;;  %v1575_v28 = vpack.c.bf16 %v749_v25, %v748_v24  ;;  %v425_v30 = vld [vmem:[%s2474_s1 + $0x60] sm:$0xff]  ;;  %v426_v31 = vld [vmem:[%s2474_s1 + $0x68] sm:$0xff] }
  0x66   : > { %1568 = vmatprep.subr.bf16.mxu1 %v1567_v21  ;;  %v1555_v29 = vpack.c.bf16 %v424_v27, %v423_v26  ;;  %v1559_v32 = vpack.c.bf16 %v426_v31, %v425_v30  ;;  %v427_v33 = vld [vmem:[%s2474_s1 + $0x70] sm:$0xff]  ;;  %v428_v34 = vld [vmem:[%s2474_s1 + $0x78] sm:$0xff]  ;;  %v401_v39 = vld [vmem:[%s2084_s18 + $0x20] sm:$0xff] }
  0x67   : > { %1542 = vmatpush3.bf16.msra.mxu0 %v1539_v7  ;;  %1570 = vmatpush3.bf16.msra.mxu1 %v1567_v21  ;;  %v1563_v35 = vpack.c.bf16 %v428_v34, %v427_v33  ;;  %v398_v36 = vld [vmem:[%s2084_s18 + $0x8] sm:$0xff]  ;;  %v399_v37 = vld [vmem:[%s2084_s18 + $0x10] sm:$0xff]  ;;  %v400_v38 = vld [vmem:[%s2084_s18 + $0x18] sm:$0xff] }
  0x68   : > { %1544 = vmatprep.subr.bf16.mxu0 %v1543_v10  ;;  %1572 = vmatprep.subr.bf16.mxu1 %v1571_v22  ;;  %v402_v40 = vld [vmem:[%s2084_s18 + $0x28] sm:$0xff]  ;;  %v403_v41 = vld [vmem:[%s2084_s18 + $0x30] sm:$0xff]  ;;  %v404_v42 = vld [vmem:[%s2084_s18 + $0x38] sm:$0xff] }
  0x69   : > { %v405_v43 = vld [vmem:[%s2084_s18 + $0x40] sm:$0xff]  ;;  %v406_v44 = vld [vmem:[%s2084_s18 + $0x48] sm:$0xff]  ;;  %v407_v45 = vld [vmem:[%s2084_s18 + $0x50] sm:$0xff] }
  0x6a   : > { %v408_v46 = vld [vmem:[%s2084_s18 + $0x58] sm:$0xff]  ;;  %v409_v47 = vld [vmem:[%s2084_s18 + $0x60] sm:$0xff]  ;;  %v410_v48 = vld [vmem:[%s2084_s18 + $0x68] sm:$0xff] }
  0x6b   : > { %1546 = vmatpush3.bf16.msra.mxu0 %v1543_v10  ;;  %1574 = vmatpush3.bf16.msra.mxu1 %v1571_v22  ;;  %v411_v49 = vld [vmem:[%s2084_s18 + $0x70] sm:$0xff]  ;;  %v412_v50 = vld [vmem:[%s2084_s18 + $0x78] sm:$0xff]  ;;  %v752_v54 = vld [vmem:[#allocation8 + $0x40] sm:$0xff] }
  0x6c   : > { %1548 = vmatprep.subr.bf16.mxu0 %v1547_v14  ;;  %1576 = vmatprep.subr.bf16.mxu1 %v1575_v28  ;;  %v750_v51 = vld [vmem:[#allocation8 + $0x30] sm:$0xff]  ;;  %v751_v52 = vld [vmem:[#allocation8 + $0x38] sm:$0xff]  ;;  %v753_v55 = vld [vmem:[#allocation8 + $0x48] sm:$0xff] }
  0x6d   : > { %v1579_v53 = vpack.c.bf16 %v751_v52, %v750_v51  ;;  %v1583_v56 = vpack.c.bf16 %v753_v55, %v752_v54  ;;  %v754_v57 = vld [vmem:[#allocation8 + $0x50] sm:$0xff]  ;;  %v755_v58 = vld [vmem:[#allocation8 + $0x58] sm:$0xff]  ;;  %v756_v60 = vld [vmem:[#allocation8 + $0x60] sm:$0xff] }
  0x6e   : > { %v1587_v59 = vpack.c.bf16 %v755_v58, %v754_v57  ;;  %v757_v61 = vld [vmem:[#allocation8 + $0x68] sm:$0xff]  ;;  %v758_v63 = vld [vmem:[#allocation8 + $0x70] sm:$0xff]  ;;  %v759_v0 = vld [vmem:[#allocation8 + $0x78] sm:$0xff] }
  0x6f   : > { %1550 = vmatpush3.bf16.msra.mxu0 %v1547_v14  ;;  %1578 = vmatpush3.bf16.msra.mxu1 %v1575_v28  ;;  %v1591_v62 = vpack.c.bf16 %v757_v61, %v756_v60  ;;  %v1595_v1 = vpack.c.bf16 %v759_v0, %v758_v63  ;;  %v2162_v2 = vld [vmem:[%s2475_s2] ss:$0 sm:$0xff] }
  0x70   : > { %1552 = vmatprep.subr.bf16.mxu0 %v1551_v23  ;;  %1580 = vmatprep.subr.bf16.mxu1 %v1579_v53 }
  0x73   : > { %1554 = vmatpush3.bf16.msra.mxu0 %v1551_v23  ;;  %1582 = vmatpush3.bf16.msra.mxu1 %v1579_v53 }
  0x74   : > { %1556 = vmatprep.subr.bf16.mxu0 %v1555_v29  ;;  %1584 = vmatprep.subr.bf16.mxu1 %v1583_v56 }
  0x77   : > { %1558 = vmatpush3.bf16.msra.mxu0 %v1555_v29  ;;  %1586 = vmatpush3.bf16.msra.mxu1 %v1583_v56 }
  0x78   : > { %1560 = vmatprep.subr.bf16.mxu0 %v1559_v32  ;;  %1588 = vmatprep.subr.bf16.mxu1 %v1587_v59 }
  0x7b   : > { %1562 = vmatpush3.bf16.msra.mxu0 %v1559_v32  ;;  %1590 = vmatpush3.bf16.msra.mxu1 %v1587_v59 }
  0x7c   : > { %1564 = vmatprep.subr.bf16.mxu0 %v1563_v35  ;;  %1592 = vmatprep.subr.bf16.mxu1 %v1591_v62 }
  0x7f   : > { %1566 = vmatpush3.bf16.msra.mxu0 %v1563_v35  ;;  %1594 = vmatpush3.bf16.msra.mxu1 %v1591_v62 }
  0x80   : > { %1596 = vmatprep.subr.bf16.mxu1 %v1595_v1 }
  0x82   : > { %1456 = vmatmul.mubr.f32.vlgmr.msra.gmra.mrb[0].mxu0 %v398_v36 }
  0x83   : > { %1458 = vmatprep.mubr.f32.mxu0 %v399_v37  ;;  %1598 = vmatpush3.bf16.msra.mxu1 %v1595_v1 }
  0x86   : > { %1459 = vmatmul.mubr.f32.gmra.mrb[2].mxu0 %v400_v38 }
  0x87   : > { %1461 = vmatprep.mubr.f32.mxu0 %v401_v39 }
  0x8a   : > { %1462 = vmatmul.mubr.f32.gmra.mrb[4].mxu0 %v402_v40 }
  0x8b   : > { %1464 = vmatprep.mubr.f32.mxu0 %v403_v41 }
  0x8e   : > { %1465 = vmatmul.mubr.f32.gmra.mrb[6].mxu0 %v404_v42 }
  0x8f   : > { %1467 = vmatprep.mubr.f32.mxu0 %v405_v43 }
  0x92   : > { %1468 = vmatmul.mubr.f32.gmra.mrb[8].mxu0 %v406_v44 }
  0x93   : > { %1470 = vmatprep.mubr.f32.mxu0 %v407_v45 }
  0x96   : > { %1471 = vmatmul.mubr.f32.gmra.mrb[10].mxu0 %v408_v46 }
  0x97   : > { %1473 = vmatprep.mubr.f32.mxu0 %v409_v47 }
  0x9a   : > { %1474 = vmatmul.mubr.f32.gmra.mrb[12].mxu0 %v410_v48 }
  0x9b   : > { %1476 = vmatprep.mubr.f32.mxu0 %v411_v49 }
  0x9e   : > { %1477 = vmatmul.mubr.f32.gmra.mrb[14].mxu0 %v412_v50 }
 0x155   : > { %v1457_v3 = vpop.f32.mrb[0].mxu0 }
 0x156   : > { %v633_v4 = vadd.f32 %v1457_v3, %v2162_v2  ;;  %v495_v5 = vpop.f32.mrb[1].mxu0 }
 0x157   : > { %v632_v6 = vadd.f32 %v2162_v2, %v495_v5 }
 0x158   : > { %v665_v7 = vmin.f32 %v633_v4, 0.0  ;;  %vm649_vm2 = vcmp.gt.f32.partialorder %v633_v4, 0.0 }
 0x159   : > { %v664_v8 = vmin.f32 %v632_v6, 0.0  ;;  %v1460_v9 = vpop.f32.mrb[2].mxu0  ;;  %vm648_vm1 = vcmp.gt.f32.partialorder %v632_v6, 0.0 }
 0x15a   : > { %v682_v10 = vmul.f32 1.442695, %v665_v7  ;;  %v2167_v11 = vadd.f32 %v1460_v9, %v2162_v2  ;;  %v505_v12 = vpop.f32.mrb[3].mxu0 }
 0x15b   : > { %v680_v13 = vmul.f32 1.442695, %v664_v8  ;;  %v2170_v14 = vadd.f32 %v2162_v2, %v505_v12 }
 0x15c   : > { %1683 = vpow2.f32 %v682_v10  ;;  %v667_v15 = vmin.f32 %v2167_v11, 0.0  ;;  %vm651_vm4 = vcmp.gt.f32.partialorder %v2167_v11, 0.0 }
 0x15d   : > { %1685 = vpow2.f32 %v680_v13  ;;  %v666_v16 = vmin.f32 %v2170_v14, 0.0  ;;  %v1463_v17 = vpop.f32.mrb[4].mxu0  ;;  %vm650_vm3 = vcmp.gt.f32.partialorder %v2170_v14, 0.0 }
 0x15e   : > { %v686_v18 = vmul.f32 1.442695, %v667_v15  ;;  %v2175_v19 = vadd.f32 %v1463_v17, %v2162_v2  ;;  %v515_v20 = vpop.f32.mrb[5].mxu0 }
 0x15f   : > { %v684_v21 = vmul.f32 1.442695, %v666_v16  ;;  %v2178_v22 = vadd.f32 %v2162_v2, %v515_v20 }
 0x160   : > { %1687 = vpow2.f32 %v686_v18  ;;  %v669_v23 = vmin.f32 %v2175_v19, 0.0  ;;  %vm653_vm6 = vcmp.gt.f32.partialorder %v2175_v19, 0.0 }
 0x161   : > { %1689 = vpow2.f32 %v684_v21  ;;  %v668_v24 = vmin.f32 %v2178_v22, 0.0  ;;  %v1466_v25 = vpop.f32.mrb[6].mxu0  ;;  %vm652_vm5 = vcmp.gt.f32.partialorder %v2178_v22, 0.0 }
 0x162   : > { %v690_v26 = vmul.f32 1.442695, %v669_v23  ;;  %v2183_v27 = vadd.f32 %v1466_v25, %v2162_v2  ;;  %v525_v28 = vpop.f32.mrb[7].mxu0 }
 0x163   : > { %v688_v29 = vmul.f32 1.442695, %v668_v24  ;;  %v2186_v30 = vadd.f32 %v2162_v2, %v525_v28 }
 0x164   : > { %1691 = vpow2.f32 %v690_v26  ;;  %v671_v31 = vmin.f32 %v2183_v27, 0.0  ;;  %vm655_vm8 = vcmp.gt.f32.partialorder %v2183_v27, 0.0 }
 0x165   : > { %1693 = vpow2.f32 %v688_v29  ;;  %v670_v32 = vmin.f32 %v2186_v30, 0.0  ;;  %v1469_v33 = vpop.f32.mrb[8].mxu0  ;;  %vm654_vm7 = vcmp.gt.f32.partialorder %v2186_v30, 0.0 }
 0x166   : > { %v1684_v34 = vpop.eup %1683  ;;  %v694_v35 = vmul.f32 1.442695, %v671_v31  ;;  %v2191_v36 = vadd.f32 %v1469_v33, %v2162_v2  ;;  %v535_v37 = vpop.f32.mrb[9].mxu0 }
 0x167   : > { %v1686_v38 = vpop.eup %1685  ;;  %v692_v39 = vmul.f32 1.442695, %v670_v32  ;;  %v2194_v40 = vadd.f32 %v2162_v2, %v535_v37  ;;  %v1334_v41 = vadd.f32 -1.0, %v1684_v34 }
 0x168   : > { %1695 = vpow2.f32 %v694_v35  ;;  %v673_v42 = vmin.f32 %v2191_v36, 0.0  ;;  %v1333_v43 = vadd.f32 -1.0, %v1686_v38  ;;  %vm657_vm10 = vcmp.gt.f32.partialorder %v2191_v36, 0.0 }
 0x169   : > { %1697 = vpow2.f32 %v692_v39  ;;  %v672_v44 = vmin.f32 %v2194_v40, 0.0  ;;  %v1472_v45 = vpop.f32.mrb[10].mxu0  ;;  %v2207_v54 = vsel %vm649_vm2, %v633_v4, %v1334_v41  ;;  %vm656_vm9 = vcmp.gt.f32.partialorder %v2194_v40, 0.0 }
 0x16a   : > { %v1688_v46 = vpop.eup %1687  ;;  %v698_v47 = vmul.f32 1.442695, %v673_v42  ;;  %v2199_v48 = vadd.f32 %v1472_v45, %v2162_v2  ;;  %v545_v49 = vpop.f32.mrb[11].mxu0  ;;  %v2201_v50 = vsel %vm648_vm1, %v632_v6, %v1333_v43  ;;  %vm1015_vm1 = vcmask 7168  }
 0x16b   : > { %v1690_v51 = vpop.eup %1689  ;;  %v696_v52 = vmul.f32 1.442695, %v672_v44  ;;  %v2204_v53 = vadd.f32 %v2162_v2, %v545_v49  ;;  %1511 = vmatprep.mubr.f32.mxu1 %v2201_v50  ;;  %v1336_v55 = vadd.f32 -1.0, %v1688_v46  ;;  %vm1064_vm2 = vcmask 0  }
 0x16c   : > { %1699 = vpow2.f32 %v698_v47  ;;  %v675_v56 = vmin.f32 %v2199_v48, 0.0  ;;  %1512 = vmatmul.mubr.f32.vlgmr.msra.gmra.mrb[0].mxu1 %v2207_v54  ;;  %v1335_v57 = vadd.f32 -1.0, %v1690_v51  ;;  %vm659_vm12 = vcmp.gt.f32.partialorder %v2199_v48, 0.0 }
 0x16d   : > { %1701 = vpow2.f32 %v696_v52  ;;  %v674_v58 = vmin.f32 %v2204_v53, 0.0  ;;  %v1475_v59 = vpop.f32.mrb[12].mxu0  ;;  %v2225_v5 = vsel %vm651_vm4, %v2167_v11, %v1336_v55  ;;  %vm658_vm11 = vcmp.gt.f32.partialorder %v2204_v53, 0.0  ;;  %v2296_v52 = vld [vmem:[%s2477_s4] ss:$0 sm:$0xff] }
 0x16e   : > { %v1692_v60 = vpop.eup %1691  ;;  %v702_v61 = vmul.f32 1.442695, %v675_v56  ;;  %v2214_v62 = vadd.f32 %v1475_v59, %v2162_v2  ;;  %v555_v63 = vpop.f32.mrb[13].mxu0  ;;  %v2217_v0 = vsel %vm650_vm3, %v2170_v14, %v1335_v57 }
 0x16f   : > { %v1694_v1 = vpop.eup %1693  ;;  %v700_v3 = vmul.f32 1.442695, %v674_v58  ;;  %v2221_v4 = vadd.f32 %v2162_v2, %v555_v63  ;;  %1514 = vmatprep.mubr.f32.mxu1 %v2217_v0  ;;  %v1338_v6 = vadd.f32 -1.0, %v1692_v60 }
 0x170   : > { %1703 = vpow2.f32 %v702_v61  ;;  %v677_v7 = vmin.f32 %v2214_v62, 0.0  ;;  %1515 = vmatmul.mubr.f32.gmra.mrb[2].mxu1 %v2225_v5  ;;  %v1337_v8 = vadd.f32 -1.0, %v1694_v1  ;;  %vm661_vm14 = vcmp.gt.f32.partialorder %v2214_v62, 0.0 }
 0x171   : > { %1705 = vpow2.f32 %v700_v3  ;;  %v676_v9 = vmin.f32 %v2221_v4, 0.0  ;;  %v1478_v10 = vpop.f32.mrb[14].mxu0  ;;  %v2241_v20 = vsel %vm653_vm6, %v2175_v19, %v1338_v6  ;;  %vm660_vm13 = vcmp.gt.f32.partialorder %v2221_v4, 0.0  ;;  %v2307_v6 = vld [vmem:[%s2478_s5] ss:$0 sm:$0xff] }
 0x172   : > { %v1696_v12 = vpop.eup %1695  ;;  %v706_v13 = vmul.f32 1.442695, %v677_v7  ;;  %v2232_v14 = vadd.f32 %v1478_v10, %v2162_v2  ;;  %v565_v11 = vpop.f32.mrb[15].mxu0  ;;  %v2235_v15 = vsel %vm652_vm5, %v2178_v22, %v1337_v8 }
 0x173   : > { %v1698_v16 = vpop.eup %1697  ;;  %v704_v17 = vmul.f32 1.442695, %v676_v9  ;;  %v646_v18 = vadd.f32 %v2162_v2, %v565_v11  ;;  %1517 = vmatprep.mubr.f32.mxu1 %v2235_v15  ;;  %v1340_v21 = vadd.f32 -1.0, %v1696_v12 }
 0x174   : > { %1707 = vpow2.f32 %v706_v13  ;;  %v679_v23 = vmin.f32 %v2232_v14, 0.0  ;;  %1518 = vmatmul.mubr.f32.gmra.mrb[4].mxu1 %v2241_v20  ;;  %v1339_v24 = vadd.f32 -1.0, %v1698_v16  ;;  %vm663_vm0 = vcmp.gt.f32.partialorder %v2232_v14, 0.0 }
 0x175   : > { %1709 = vpow2.f32 %v704_v17  ;;  %v678_v22 = vmin.f32 %v646_v18, 0.0  ;;  %v2252_v29 = vsel %vm655_vm8, %v2183_v27, %v1340_v21  ;;  %vm662_vm15 = vcmp.gt.f32.partialorder %v646_v18, 0.0 }
 0x176   : > { %v1700_v25 = vpop.eup %1699  ;;  %v710_v26 = vmul.f32 1.442695, %v679_v23  ;;  %v2247_v2 = vsel %vm654_vm7, %v2186_v30, %v1339_v24 }
 0x177   : > { %v1702_v19 = vpop.eup %1701  ;;  %v708_v28 = vmul.f32 1.442695, %v678_v22  ;;  %1520 = vmatprep.mubr.f32.mxu1 %v2247_v2  ;;  %v1342_v31 = vadd.f32 -1.0, %v1700_v25 }
 0x178   : > { %1711 = vpow2.f32 %v710_v26  ;;  %1521 = vmatmul.mubr.f32.gmra.mrb[6].mxu1 %v2252_v29  ;;  %v1341_v32 = vadd.f32 -1.0, %v1702_v19 }
 0x179   : > { %1713 = vpow2.f32 %v708_v28  ;;  %v2262_v27 = vsel %vm657_vm10, %v2191_v36, %v1342_v31 }
 0x17a   : > { %v1704_v33 = vpop.eup %1703  ;;  %v2257_v30 = vsel %vm656_vm9, %v2194_v40, %v1341_v32 }
 0x17b   : > { %v1706_v34 = vpop.eup %1705  ;;  %1523 = vmatprep.mubr.f32.mxu1 %v2257_v30  ;;  %v1344_v35 = vadd.f32 -1.0, %v1704_v33 }
 0x17c   : > { %1524 = vmatmul.mubr.f32.gmra.mrb[8].mxu1 %v2262_v27  ;;  %v1343_v37 = vadd.f32 -1.0, %v1706_v34 }
 0x17d   : > { %v2272_v41 = vsel %vm659_vm12, %v2199_v48, %v1344_v35 }
 0x17e   : > { %v1708_v38 = vpop.eup %1707  ;;  %v2267_v39 = vsel %vm658_vm11, %v2204_v53, %v1343_v37 }
 0x17f   : > { %v1710_v40 = vpop.eup %1709  ;;  %1526 = vmatprep.mubr.f32.mxu1 %v2267_v39  ;;  %v1346_v36 = vadd.f32 -1.0, %v1708_v38 }
 0x180   : > { %1527 = vmatmul.mubr.f32.gmra.mrb[10].mxu1 %v2272_v41  ;;  %v1345_v42 = vadd.f32 -1.0, %v1710_v40 }
 0x181   : > { %v2282_v46 = vsel %vm661_vm14, %v2214_v62, %v1346_v36 }
 0x182   : > { %v1712_v43 = vpop.eup %1711  ;;  %v2277_v44 = vsel %vm660_vm13, %v2221_v4, %v1345_v42 }
 0x183   : > { %v1714_v45 = vpop.eup %1713  ;;  %1529 = vmatprep.mubr.f32.mxu1 %v2277_v44  ;;  %v1348_v47 = vadd.f32 -1.0, %v1712_v43 }
 0x184   : > { %1530 = vmatmul.mubr.f32.gmra.mrb[12].mxu1 %v2282_v46  ;;  %v1347_v48 = vadd.f32 -1.0, %v1714_v45 }
 0x185   : > { %v2290_v51 = vsel %vm663_vm0, %v2232_v14, %v1348_v47 }
 0x186   : > { %v2285_v49 = vsel %vm662_vm15, %v646_v18, %v1347_v48 }
 0x187   : > { %1532 = vmatprep.mubr.f32.mxu1 %v2285_v49 }
 0x188   : > { %1533 = vmatmul.mubr.f32.gmra.mrb[14].mxu1 %v2290_v51 }
 0x23f   : > { %v1513_v53 = vpop.f32.mrb[0].mxu1 }
 0x240   : > { %v833_v55 = vpop.f32.mrb[1].mxu1  ;;  %v839_v56 = vadd.f32 %v1513_v53, %v2296_v52 }
 0x241   : > { %v834_v57 = vadd.f32 %v2296_v52, %v833_v55 }
 0x243   : > { %1715 = vtanh.f32 %v834_v57  ;;  %v1516_v58 = vpop.f32.mrb[2].mxu1 }
 0x244   : > { %v843_v59 = vpop.f32.mrb[3].mxu1  ;;  %1717 = vtanh.f32 %v839_v56  ;;  %v849_v60 = vadd.f32 %v1516_v58, %v2296_v52 }
 0x245   : > { %v844_v61 = vadd.f32 %v2296_v52, %v843_v59 }
 0x247   : > { %1719 = vtanh.f32 %v844_v61  ;;  %v1519_v62 = vpop.f32.mrb[4].mxu1 }
 0x248   : > { %v853_v63 = vpop.f32.mrb[5].mxu1  ;;  %1721 = vtanh.f32 %v849_v60  ;;  %v859_v1 = vadd.f32 %v1519_v62, %v2296_v52 }
 0x249   : > { %v854_v3 = vadd.f32 %v2296_v52, %v853_v63 }
 0x24b   : > { %1723 = vtanh.f32 %v854_v3  ;;  %v1522_v4 = vpop.f32.mrb[6].mxu1 }
 0x24c   : > { %v863_v7 = vpop.f32.mrb[7].mxu1  ;;  %1725 = vtanh.f32 %v859_v1  ;;  %v869_v9 = vadd.f32 %v1522_v4, %v2296_v52 }
 0x24d   : > { %v1716_v8 = vpop.eup %1715  ;;  %v864_v10 = vadd.f32 %v2296_v52, %v863_v7 }
 0x24e   : > { %v935_v12 = vmul.f32 %v1716_v8, %v2307_v6  ;;  %v1718_v13 = vpop.eup %1717 }
 0x24f   : > { %1727 = vtanh.f32 %v864_v10  ;;  %v1525_v14 = vpop.f32.mrb[8].mxu1  ;;  %v936_v21 = vmul.f32 %v1718_v13, %v2307_v6  ;;  %v983_v13 = vld [vmem:[%s2479_s6] sm:$0xff] }
 0x250   : > { %951 = vadd.xlane.f32.xlu0 %v935_v12  ;;  %v873_v11 = vpop.f32.mrb[9].mxu1  ;;  %1729 = vtanh.f32 %v869_v9  ;;  %v879_v17 = vadd.f32 %v1525_v14, %v2296_v52  ;;  %v1904_v12 = vmov 0  }
 0x251   : > { %v1720_v16 = vpop.eup %1719  ;;  %v874_v18 = vadd.f32 %v2296_v52, %v873_v11  ;;  %1682 = vset.pattern.permute.xlu0 %v1904_v12  ;;  %v984_v11 = vld [vmem:[%s2479_s6 + $0x8] sm:$0xff] }
 0x252   : > { %v937_v23 = vmul.f32 %v1720_v16, %v2307_v6  ;;  %v1722_v24 = vpop.eup %1721  ;;  %v985_v16 = vld [vmem:[%s2479_s6 + $0x10] sm:$0xff] }
 0x253   : > { %1731 = vtanh.f32 %v874_v18  ;;  %v1528_v22 = vpop.f32.mrb[10].mxu1  ;;  %v938_v31 = vmul.f32 %v1722_v24, %v2307_v6  ;;  %v986_v24 = vld [vmem:[%s2479_s6 + $0x18] sm:$0xff] }
 0x254   : > { %953 = vadd.xlane.f32.xlu0 %v936_v21  ;;  %955 = vadd.xlane.f32.xlu1 %v937_v23  ;;  %v883_v25 = vpop.f32.mrb[11].mxu1  ;;  %1733 = vtanh.f32 %v879_v17  ;;  %v889_v19 = vadd.f32 %v1528_v22, %v2296_v52  ;;  %v987_v22 = vld [vmem:[%s2479_s6 + $0x20] sm:$0xff] }
 0x255   : > { %v1724_v26 = vpop.eup %1723  ;;  %v884_v28 = vadd.f32 %v2296_v52, %v883_v25 }
 0x256   : > { %v939_v32 = vmul.f32 %v1724_v26, %v2307_v6  ;;  %v1726_v33 = vpop.eup %1725 }
 0x257   : > { %1735 = vtanh.f32 %v884_v28  ;;  %v1531_v34 = vpop.f32.mrb[12].mxu1  ;;  %v940_v36 = vmul.f32 %v1726_v33, %v2307_v6 }
 0x258   : > { %957 = vadd.xlane.f32.xlu1 %v938_v31  ;;  %959 = vadd.xlane.f32.xlu0 %v939_v32  ;;  %v893_v35 = vpop.f32.mrb[13].mxu1  ;;  %1737 = vtanh.f32 %v889_v19  ;;  %v899_v38 = vadd.f32 %v1531_v34, %v2296_v52 }
 0x259   : > { %v1728_v37 = vpop.eup %1727  ;;  %v894_v40 = vadd.f32 %v2296_v52, %v893_v35 }
 0x25a   : > { %v941_v42 = vmul.f32 %v1728_v37, %v2307_v6  ;;  %v1730_v43 = vpop.eup %1729  ;;  %v988_v37 = vld [vmem:[%s2479_s6 + $0x28] sm:$0xff] }
 0x25b   : > { %1739 = vtanh.f32 %v894_v40  ;;  %v1534_v45 = vpop.f32.mrb[14].mxu1  ;;  %v942_v56 = vmul.f32 %v1730_v43, %v2307_v6 }
 0x25c   : > { %961 = vadd.xlane.f32.xlu1 %v940_v36  ;;  %963 = vadd.xlane.f32.xlu0 %v941_v42  ;;  %v903_v47 = vpop.f32.mrb[15].mxu1  ;;  %1741 = vtanh.f32 %v899_v38  ;;  %v909_v53 = vadd.f32 %v1534_v45, %v2296_v52  ;;  %v989_v38 = vld [vmem:[%s2479_s6 + $0x30] sm:$0xff] }
 0x25d   : > { %v1732_v48 = vpop.eup %1731  ;;  %v904_v55 = vadd.f32 %v2296_v52, %v903_v47 }
 0x25e   : > { %v943_v57 = vmul.f32 %v1732_v48, %v2307_v6  ;;  %v1734_v58 = vpop.eup %1733 }
 0x25f   : > { %1743 = vtanh.f32 %v904_v55  ;;  %v944_v60 = vmul.f32 %v1734_v58, %v2307_v6  ;;  %v990_v55 = vld [vmem:[%s2479_s6 + $0x38] sm:$0xff] }
 0x260   : > { %965 = vadd.xlane.f32.xlu1 %v942_v56  ;;  %967 = vadd.xlane.f32.xlu0 %v943_v57  ;;  %1745 = vtanh.f32 %v909_v53  ;;  %v991_v56 = vld [vmem:[%s2479_s6 + $0x40] sm:$0xff] }
 0x261   : > { %v1736_v59 = vpop.eup %1735 }
 0x262   : > { %v945_v61 = vmul.f32 %v1736_v59, %v2307_v6  ;;  %v1738_v62 = vpop.eup %1737 }
 0x263   : > { %v946_v52 = vmul.f32 %v1738_v62, %v2307_v6 }
 0x264   : > { %969 = vadd.xlane.f32.xlu1 %v944_v60  ;;  %971 = vadd.xlane.f32.xlu0 %v945_v61 }
 0x265   : > { %v1740_v63 = vpop.eup %1739 }
 0x266   : > { %v947_v1 = vmul.f32 %v1740_v63, %v2307_v6  ;;  %v1742_v3 = vpop.eup %1741 }
 0x267   : > { %v948_v7 = vmul.f32 %v1742_v3, %v2307_v6  ;;  %v993_v3 = vld [vmem:[%s2479_s6 + $0x50] sm:$0xff] }
 0x268   : > { %973 = vadd.xlane.f32.xlu1 %v946_v52  ;;  %975 = vadd.xlane.f32.xlu0 %v947_v1  ;;  %v992_v1 = vld [vmem:[%s2479_s6 + $0x48] sm:$0xff] }
 0x269   : > { %v1744_v4 = vpop.eup %1743 }
 0x26a   : > { %v949_v8 = vmul.f32 %v1744_v4, %v2307_v6  ;;  %v1746_v9 = vpop.eup %1745 }
 0x26b   : > { %v950_v10 = vmul.f32 %v1746_v9, %v2307_v6 }
 0x26c   : > { %977 = vadd.xlane.f32.xlu1 %v948_v7  ;;  %979 = vadd.xlane.f32.xlu0 %v949_v8 }
 0x270   : > { %981 = vadd.xlane.f32.xlu1 %v950_v10 }
 0x2dd   : > { %v952_v14 = vpop.xlane.xlu0 %951 }
 0x2de   : > { %v999_v17 = vmul.f32 %v983_v13, %v952_v14 }
 0x2e0   : > { %v1016_v25 = vsel %vm1015_vm1, %v999_v17, 0.0 }
 0x2e1   : > { %v954_v18 = vpop.xlane.xlu0 %953  ;;  %v956_v6 = vpop.xlane.xlu1 %955 }
 0x2e2   : > { %v1000_v21 = vmul.f32 %v984_v11, %v954_v18  ;;  %v1001_v23 = vmul.f32 %v985_v16, %v956_v6  ;;  %v994_v11 = vld [vmem:[%s2479_s6 + $0x58] sm:$0xff]  ;;  %v995_v16 = vld [vmem:[%s2479_s6 + $0x60] sm:$0xff] }
 0x2e4   : > { %v1017_v26 = vsel %vm1015_vm1, %v1000_v21, 0.0  ;;  %v1019_v32 = vsel %vm1015_vm1, %v1001_v23, 0.0 }
 0x2e5   : > { %v1018_v19 = vadd.f32 %v1017_v26, %v1016_v25  ;;  %v958_v28 = vpop.xlane.xlu1 %957  ;;  %v960_v31 = vpop.xlane.xlu0 %959  ;;  %v996_v26 = vld [vmem:[%s2479_s6 + $0x68] sm:$0xff] }
 0x2e6   : > { %v1002_v33 = vmul.f32 %v986_v24, %v958_v28  ;;  %v1003_v34 = vmul.f32 %v987_v22, %v960_v31 }
 0x2e7   : > { %v1020_v35 = vadd.f32 %v1019_v32, %v1018_v19  ;;  %v997_v19 = vld [vmem:[%s2479_s6 + $0x70] sm:$0xff] }
 0x2e8   : > { %v1021_v40 = vsel %vm1015_vm1, %v1002_v33, 0.0  ;;  %v1023_v45 = vsel %vm1015_vm1, %v1003_v34, 0.0 }
 0x2e9   : > { %v1022_v36 = vadd.f32 %v1021_v40, %v1020_v35  ;;  %v962_v42 = vpop.xlane.xlu1 %961  ;;  %v964_v43 = vpop.xlane.xlu0 %963  ;;  %v998_v40 = vld [vmem:[%s2479_s6 + $0x78] sm:$0xff] }
 0x2ea   : > { %v1004_v47 = vmul.f32 %v988_v37, %v962_v42  ;;  %v1005_v48 = vmul.f32 %v989_v38, %v964_v43 }
 0x2eb   : > { %v1024_v53 = vadd.f32 %v1023_v45, %v1022_v36 }
 0x2ec   : > { %v1025_v57 = vsel %vm1015_vm1, %v1004_v47, 0.0  ;;  %v1027_v61 = vsel %vm1015_vm1, %v1005_v48, 0.0 }
 0x2ed   : > { %v1026_v58 = vadd.f32 %v1025_v57, %v1024_v53  ;;  %v966_v59 = vpop.xlane.xlu1 %965  ;;  %v968_v60 = vpop.xlane.xlu0 %967 }
 0x2ee   : > { %v1006_v62 = vmul.f32 %v990_v55, %v966_v59  ;;  %v1007_v63 = vmul.f32 %v991_v56, %v968_v60 }
 0x2ef   : > { %v1028_v52 = vadd.f32 %v1027_v61, %v1026_v58  ;;  %v1053_v61 = vld [vmem:[#allocation3] sm:$0x1] }
 0x2f0   : > { %v1029_v4 = vsel %vm1015_vm1, %v1006_v62, 0.0  ;;  %v1031_v10 = vsel %vm1015_vm1, %v1007_v63, 0.0 }
 0x2f1   : > { %v1030_v7 = vadd.f32 %v1029_v4, %v1028_v52  ;;  %v970_v8 = vpop.xlane.xlu1 %969  ;;  %v972_v9 = vpop.xlane.xlu0 %971 }
 0x2f2   : > { %v1008_v12 = vmul.f32 %v992_v1, %v970_v8  ;;  %v1009_v13 = vmul.f32 %v993_v3, %v972_v9 }
 0x2f3   : > { %v1032_v14 = vadd.f32 %v1031_v10, %v1030_v7  ;;  %v1083_v7 = vlaneseq  ;;  %v1061_v10 = vld [vmem:[#allocation4] sm:$0x1] }
 0x2f4   : > { %v1033_v17 = vsel %vm1015_vm1, %v1008_v12, 0.0  ;;  %v1035_v23 = vsel %vm1015_vm1, %v1009_v13, 0.0 }
 0x2f5   : > { %v1034_v18 = vadd.f32 %v1033_v17, %v1032_v14  ;;  %v974_v6 = vpop.xlane.xlu1 %973  ;;  %v976_v21 = vpop.xlane.xlu0 %975  ;;  %v2400_v8 = vshrl.u32 %v1083_v7, 7 }
 0x2f6   : > { %v1010_v24 = vmul.f32 %v994_v11, %v974_v6  ;;  %v1011_v22 = vmul.f32 %v995_v16, %v976_v21 }
 0x2f7   : > { %v1036_v25 = vadd.f32 %v1035_v23, %v1034_v18  ;;  %v1085_v9 = vsub.s32 0, %v2400_v8  ;;  %v1066_v18 = vld [vmem:[#allocation10] sm:$0xff] }
 0x2f8   : > { %v1037_v28 = vsel %vm1015_vm1, %v1010_v24, 0.0  ;;  %v1039_v34 = vsel %vm1015_vm1, %v1011_v22, 0.0  ;;  %v1067_v22 = vld [vmem:[#allocation10 + $0x8] sm:$0xff] }
 0x2f9   : > { %v1038_v31 = vadd.f32 %v1037_v28, %v1036_v25  ;;  %v978_v32 = vpop.xlane.xlu1 %977  ;;  %v980_v33 = vpop.xlane.xlu0 %979  ;;  %v1068_v25 = vld [vmem:[#allocation10 + $0x10] sm:$0xff] }
 0x2fa   : > { %v1012_v35 = vmul.f32 %v996_v26, %v978_v32  ;;  %v1013_v37 = vmul.f32 %v997_v19, %v980_v33  ;;  %v1069_v26 = vld [vmem:[#allocation10 + $0x18] sm:$0xff]  ;;  %v1070_v33 = vld [vmem:[#allocation10 + $0x20] sm:$0xff] }
 0x2fb   : > { %v1040_v38 = vadd.f32 %v1039_v34, %v1038_v31  ;;  %v1071_v34 = vld [vmem:[#allocation10 + $0x28] sm:$0xff] }
 0x2fc   : > { %v1041_v36 = vsel %vm1015_vm1, %v1012_v35, 0.0  ;;  %v1043_v45 = vsel %vm1015_vm1, %v1013_v37, 0.0  ;;  %v1073_v37 = vld [vmem:[#allocation10 + $0x38] sm:$0xff] }
 0x2fd   : > { %v1042_v42 = vadd.f32 %v1041_v36, %v1040_v38  ;;  %v982_v43 = vpop.xlane.xlu1 %981  ;;  %v1074_v38 = vld [vmem:[#allocation10 + $0x40] sm:$0xff]  ;;  %v1076_v36 = vld [vmem:[#allocation10 + $0x50] sm:$0xff] }
 0x2fe   : > { %v1014_v47 = vmul.f32 %v998_v40, %v982_v43 }
 0x2ff   : > { %v1044_v48 = vadd.f32 %v1043_v45, %v1042_v42  ;;  %v1077_v42 = vld [vmem:[#allocation10 + $0x58] sm:$0xff]  ;;  %v1080_v45 = vld [vmem:[#allocation10 + $0x70] sm:$0xff] }
 0x300   : > { %v1045_v53 = vsel %vm1015_vm1, %v1014_v47, 0.0 }
 0x301   : > { %v1046_v55 = vadd.f32 %v1045_v53, %v1044_v48 }
 0x303   : > { %v1047_v56 = vrot.slane %v1046_v55, 4 }
 0x305   : > { %v1048_v57 = vadd.f32 %v1047_v56, %v1046_v55 }
 0x307   : > { %v1049_v58 = vrot.slane %v1048_v57, 2 }
 0x309   : > { %v1050_v59 = vadd.f32 %v1049_v58, %v1048_v57 }
 0x30b   : > { %v1051_v60 = vrot.slane %v1050_v59, 1 }
 0x30d   : > { %v1052_v62 = vadd.f32 %v1051_v60, %v1050_v59 }
 0x30f   : > { %v1054_v63 = vmax.f32 %v1053_v61, %v1052_v62 }
 0x311   : > { %1159 = vst.msk [vmem:[#allocation3] sm:$0x1] %vm1064_vm2, %v1054_v63  ;;  %v1058_v52 = vsub.f32 %v1052_v62, %v1054_v63  ;;  %v1055_v1 = vsub.f32 %v1053_v61, %v1054_v63 }
 0x313   : > { %v1059_v3 = vmul.f32 1.442695, %v1058_v52  ;;  %v1056_v4 = vmul.f32 1.442695, %v1055_v1 }
 0x315   : > { %1747 = vpow2.f32 %v1059_v3 }
 0x316   : > { %1749 = vpow2.f32 %v1056_v4 }
 0x31f   : > { %v1748_v12 = vpop.eup %1747 }
 0x320   : > { %v1750_v13 = vpop.eup %1749  ;;  %1599 = vpush %v1748_v12 }
 0x321   : > { %v1086_v14 = vrot.slane %v1750_v13, %v1085_v9  ;;  %v1062_v11 = vmul.f32 %v1750_v13, %v1061_v10 }
 0x323   : > { %1088 = vperm.xlu0 %1682, %v1086_v14   ;;  %v1063_v16 = vadd.f32 %v1748_v12, %v1062_v11 }
 0x325   : > { %1065 = vst.msk [vmem:[#allocation4] sm:$0x1] %vm1064_vm2, %v1063_v16 }
 0x351   : > { %s1600_s15 = spop %1599 }
 0x352   : > { %v1109_v17 = vstv %s1600_s15 }
 0x353   : > { %v1111_v6 = vmul.f32 %v1109_v17, %v2201_v50  ;;  %v1112_v21 = vmul.f32 %v1109_v17, %v2207_v54  ;;  %v1113_v23 = vmul.f32 %v1109_v17, %v2217_v0  ;;  %v1114_v24 = vmul.f32 %v1109_v17, %v2225_v5  ;;  %v1072_v50 = vld [vmem:[#allocation10 + $0x30] sm:$0xff] }
 0x354   : > { %v1115_v19 = vmul.f32 %v1109_v17, %v2235_v15  ;;  %v1116_v28 = vmul.f32 %v1109_v17, %v2241_v20  ;;  %v1117_v31 = vmul.f32 %v1109_v17, %v2247_v2  ;;  %v1118_v32 = vmul.f32 %v1109_v17, %v2252_v29  ;;  %v1075_v15 = vld [vmem:[#allocation10 + $0x48] sm:$0xff] }
 0x355   : > { %v1119_v54 = vmul.f32 %v1109_v17, %v2257_v30  ;;  %v1120_v0 = vmul.f32 %v1109_v17, %v2262_v27  ;;  %v1121_v5 = vmul.f32 %v1109_v17, %v2267_v39  ;;  %v1122_v35 = vmul.f32 %v1109_v17, %v2272_v41  ;;  %v1078_v30 = vld [vmem:[#allocation10 + $0x60] sm:$0xff]  ;;  %v1079_v27 = vld [vmem:[#allocation10 + $0x68] sm:$0xff]  ;;  %v1081_v39 = vld [vmem:[#allocation10 + $0x78] sm:$0xff] }
 0x356   : > { %v1123_v20 = vmul.f32 %v1109_v17, %v2277_v44  ;;  %v1124_v2 = vmul.f32 %v1109_v17, %v2282_v46  ;;  %v1125_v29 = vmul.f32 %v1109_v17, %v2285_v49  ;;  %v1126_v40 = vmul.f32 %v1109_v17, %v2290_v51 }
 0x3a2   : > { %v1089_v43 = vpop.permute.xlu0 %1088 }
 0x3a3   : > { %v1091_v47 = vmul.f32 %v1089_v43, %v1066_v18  ;;  %v1092_v41 = vmul.f32 %v1089_v43, %v1067_v22  ;;  %v1093_v48 = vmul.f32 %v1089_v43, %v1068_v25  ;;  %v1094_v53 = vmul.f32 %v1089_v43, %v1069_v26 }
 0x3a4   : > { %v1095_v55 = vmul.f32 %v1089_v43, %v1070_v33  ;;  %v1096_v56 = vmul.f32 %v1089_v43, %v1071_v34  ;;  %v1097_v44 = vmul.f32 %v1089_v43, %v1072_v50  ;;  %v1098_v57 = vmul.f32 %v1089_v43, %v1073_v37 }
 0x3a5   : > { %v1099_v46 = vmul.f32 %v1089_v43, %v1074_v38  ;;  %v1100_v58 = vmul.f32 %v1089_v43, %v1075_v15  ;;  %v1101_v49 = vmul.f32 %v1089_v43, %v1076_v36  ;;  %v1102_v59 = vmul.f32 %v1089_v43, %v1077_v42 }
 0x3a6   : > { %v1103_v51 = vmul.f32 %v1089_v43, %v1078_v30  ;;  %v1104_v60 = vmul.f32 %v1089_v43, %v1079_v27  ;;  %v1105_v61 = vmul.f32 %v1089_v43, %v1080_v45  ;;  %v1106_v62 = vmul.f32 %v1089_v43, %v1081_v39 }
 0x3a7   : > { %v1127_v63 = vadd.f32 %v1111_v6, %v1091_v47  ;;  %v1128_v52 = vadd.f32 %v1112_v21, %v1092_v41  ;;  %v1129_v1 = vadd.f32 %v1113_v23, %v1093_v48  ;;  %v1130_v3 = vadd.f32 %v1114_v24, %v1094_v53  ;;  %v1181_v6 = vld [vmem:[#allocation4] sm:$0x1] (%p1160_p1) }
 0x3a8   : > { %v1131_v4 = vadd.f32 %v1115_v19, %v1095_v55  ;;  %v1132_v7 = vadd.f32 %v1116_v28, %v1096_v56  ;;  %v1133_v10 = vadd.f32 %v1117_v31, %v1097_v44  ;;  %v1134_v12 = vadd.f32 %v1118_v32, %v1098_v57 }
 0x3a9   : > { %v1135_v13 = vadd.f32 %v1119_v54, %v1099_v46  ;;  %v1136_v14 = vadd.f32 %v1120_v0, %v1100_v58  ;;  %v1137_v11 = vadd.f32 %v1121_v5, %v1101_v49  ;;  %v1138_v16 = vadd.f32 %v1122_v35, %v1102_v59  ;;  %1143 = vst [vmem:[#allocation10] sm:$0xff] %v1127_v63 }
 0x3aa   : > { %1144 = vst [vmem:[#allocation10 + $0x8] sm:$0xff] %v1128_v52  ;;  %1145 = vst [vmem:[#allocation10 + $0x10] sm:$0xff] %v1129_v1  ;;  %v1139_v17 = vadd.f32 %v1123_v20, %v1103_v51  ;;  %v1140_v18 = vadd.f32 %v1124_v2, %v1104_v60  ;;  %v1141_v22 = vadd.f32 %v1125_v29, %v1105_v61  ;;  %v1905_v21 = vmov (%p1160_p1), 0  }
 0x3ab   : > { %1146 = vst [vmem:[#allocation10 + $0x18] sm:$0xff] %v1130_v3  ;;  %v1142_v25 = vadd.f32 %v1126_v40, %v1106_v62  ;;  %1147 = vst [vmem:[#allocation10 + $0x20] sm:$0xff] %v1131_v4  ;;  %1164 = sbr.rel (!%p1160_p1) target bundleno = 1091 (0x443), region = 72  ;;  %1751 = vset.pattern.permute.xlu0 (%p1160_p1), %v1905_v21  ;;  %1752 = vrcp.f32 (%p1160_p1), %v1181_v6 }
 0x3ac   : > { %1148 = vst [vmem:[#allocation10 + $0x28] sm:$0xff] %v1132_v7  ;;  %1149 = vst [vmem:[#allocation10 + $0x30] sm:$0xff] %v1133_v10 }
 0x3ad   : > { %1150 = vst [vmem:[#allocation10 + $0x38] sm:$0xff] %v1134_v12  ;;  %1151 = vst [vmem:[#allocation10 + $0x40] sm:$0xff] %v1135_v13 }
 0x3ae   : > { %1152 = vst [vmem:[#allocation10 + $0x48] sm:$0xff] %v1136_v14  ;;  %1153 = vst [vmem:[#allocation10 + $0x50] sm:$0xff] %v1137_v11 }
 0x3af   : > { %1154 = vst [vmem:[#allocation10 + $0x58] sm:$0xff] %v1138_v16  ;;  %1155 = vst [vmem:[#allocation10 + $0x60] sm:$0xff] %v1139_v17 }
 0x3b0   : > { %1156 = vst [vmem:[#allocation10 + $0x68] sm:$0xff] %v1140_v18  ;;  %1157 = vst [vmem:[#allocation10 + $0x70] sm:$0xff] %v1141_v22  ;;  %v1165_v26 = vld [vmem:[#allocation10] sm:$0xff] (%p1160_p1) }
 0x3b1   : > { %1158 = vst [vmem:[#allocation10 + $0x78] sm:$0xff] %v1142_v25  ;;  %v1166_v19 = vld [vmem:[#allocation10 + $0x8] sm:$0xff] (%p1160_p1)  ;;  %v1167_v28 = vld [vmem:[#allocation10 + $0x10] sm:$0xff] (%p1160_p1) }
 0x3b2   : > { %v1168_v31 = vld [vmem:[#allocation10 + $0x18] sm:$0xff]  ;;  %v1169_v32 = vld [vmem:[#allocation10 + $0x20] sm:$0xff] }
 0x3b3   : > { %v1170_v33 = vld [vmem:[#allocation10 + $0x28] sm:$0xff]  ;;  %v1171_v34 = vld [vmem:[#allocation10 + $0x30] sm:$0xff] }
 0x3b4   : > { %v1172_v50 = vld [vmem:[#allocation10 + $0x38] sm:$0xff]  ;;  %v1173_v54 = vld [vmem:[#allocation10 + $0x40] sm:$0xff] }
 0x3b5   : > { %v1753_v23 = vpop.eup %1752  ;;  %v1174_v0 = vld [vmem:[#allocation10 + $0x48] sm:$0xff]  ;;  %v1175_v35 = vld [vmem:[#allocation10 + $0x50] sm:$0xff] }
 0x3b6   : > { %v1188_v24 = vrot.slane %v1753_v23, %v1085_v9  ;;  %v1176_v37 = vld [vmem:[#allocation10 + $0x58] sm:$0xff]  ;;  %v1177_v38 = vld [vmem:[#allocation10 + $0x60] sm:$0xff] }
 0x3b7   : > { %v1178_v15 = vld [vmem:[#allocation10 + $0x68] sm:$0xff]  ;;  %v1179_v20 = vld [vmem:[#allocation10 + $0x70] sm:$0xff] }
 0x3b8   : > { %1190 = vperm.xlu0 %1751, %v1188_v24   ;;  %v1180_v2 = vld [vmem:[#allocation10 + $0x78] sm:$0xff] }
 0x437   : > { %v1191_v5 = vpop.permute.xlu0 %1190 }
 0x438   : > { %v1193_v8 = vmul.f32 %v1191_v5, %v1165_v26  ;;  %v1194_v9 = vmul.f32 %v1191_v5, %v1166_v19  ;;  %v1195_v29 = vmul.f32 %v1191_v5, %v1167_v28  ;;  %v1196_v40 = vmul.f32 %v1191_v5, %v1168_v31 }
 0x439   : > { %v1197_v36 = vmul.f32 %v1191_v5, %v1169_v32  ;;  %v1198_v42 = vmul.f32 %v1191_v5, %v1170_v33  ;;  %v1199_v30 = vmul.f32 %v1191_v5, %v1171_v34  ;;  %v1200_v43 = vmul.f32 %v1191_v5, %v1172_v50 }
 0x43a   : > { %v1201_v27 = vmul.f32 %v1191_v5, %v1173_v54  ;;  %v1202_v45 = vmul.f32 %v1191_v5, %v1174_v0  ;;  %v1203_v39 = vmul.f32 %v1191_v5, %v1175_v35  ;;  %v1204_v47 = vmul.f32 %v1191_v5, %v1176_v37  ;;  %1209 = vst [vmem:[#allocation10] sm:$0xff] %v1193_v8 }
 0x43b   : > { %1210 = vst [vmem:[#allocation10 + $0x8] sm:$0xff] %v1194_v9  ;;  %1211 = vst [vmem:[#allocation10 + $0x10] sm:$0xff] %v1195_v29  ;;  %v1205_v41 = vmul.f32 %v1191_v5, %v1177_v38  ;;  %v1206_v48 = vmul.f32 %v1191_v5, %v1178_v15  ;;  %v1207_v53 = vmul.f32 %v1191_v5, %v1179_v20 }
 0x43c   : > { %1212 = vst [vmem:[#allocation10 + $0x18] sm:$0xff] %v1196_v40  ;;  %v1208_v55 = vmul.f32 %v1191_v5, %v1180_v2  ;;  %1213 = vst [vmem:[#allocation10 + $0x20] sm:$0xff] %v1197_v36 }
 0x43d   : > { %1214 = vst [vmem:[#allocation10 + $0x28] sm:$0xff] %v1198_v42  ;;  %1215 = vst [vmem:[#allocation10 + $0x30] sm:$0xff] %v1199_v30 }
 0x43e   : > { %1216 = vst [vmem:[#allocation10 + $0x38] sm:$0xff] %v1200_v43  ;;  %1217 = vst [vmem:[#allocation10 + $0x40] sm:$0xff] %v1201_v27 }
 0x43f   : > { %1218 = vst [vmem:[#allocation10 + $0x48] sm:$0xff] %v1202_v45  ;;  %1219 = vst [vmem:[#allocation10 + $0x50] sm:$0xff] %v1203_v39 }
 0x440   : > { %1220 = vst [vmem:[#allocation10 + $0x58] sm:$0xff] %v1204_v47  ;;  %1221 = vst [vmem:[#allocation10 + $0x60] sm:$0xff] %v1205_v41 }
 0x441   : > { %1222 = vst [vmem:[#allocation10 + $0x68] sm:$0xff] %v1206_v48  ;;  %1223 = vst [vmem:[#allocation10 + $0x70] sm:$0xff] %v1207_v53 }
 0x442   : > { %1224 = vst [vmem:[#allocation10 + $0x78] sm:$0xff] %v1208_v55 }
 0x443 PF: > { %s2494_s27 = sadd.s32 4294967295, %s1896_s29   ;;  %s1906_s13 = smov [#allocation10]  }
 0x444   : > { %p2429_p4 = scmp.eq.s32.totalorder %s2494_s27, 2  ;;  %s1231_s19 = sshll.u32 %s1906_s13, 4  ;;  %s1232_s19 = int_to_ptr.vmem [resolvable:$true] %s1231_s19 }
 0x445   : > { %s1812_s22 = scalar_lea.vmem %s1232_s19, 2048  ;;  %p1819_p10 = scmp.lt.s32.totalorder %s1232_s19, %s1232_s19 }
 0x446   : > { %p1813_p5 = scmp.ne.s32.totalorder %s1232_s19, %s1812_s22  ;;  %p1820_p11 = scmp.lt.s32.totalorder %s1812_s22, %s1812_s22 }
 0x448   : > { %p1814_p8 = pnand %p1813_p5, %p2429_p4  ;;  %p1821_p13 = por %p1820_p11, %p1819_p10 }
 0x44a   : > { %p1815_p9 = pneg %p1814_p8 }
 0x44c   : > { %p1822_p2 = pnand %p1821_p13, %p1815_p9 }
 0x44e   : > { %1825 = shalt.err (!%p1822_p2)
}
 0x44f   : > { %s1826_s11 = scalar_lea.hbm %s2480_s7, 2048 }
 0x450   : > { %p1827_p3 = scmp.ne.s32.totalorder %s2480_s7, %s1826_s11  ;;  %p1832_p6 = scmp.lt.u32.totalorder %s1826_s11, %s2480_s7 }
 0x452   : > { %p1828_p12 = pnand %p1827_p3, %p2429_p4 }
 0x454   : > { %p1829_p0 = pneg %p1828_p12 }
 0x456   : > { %p1834_p7 = pnand %p1832_p6, %p1829_p0 }
 0x458   : > { %1837 = shalt.err (!%p1834_p7)
}
 0x459   : > { %s1907_s10 = smov 128   ;;  %s1908_s23 = smov 8  }
 0x45a   : > { %1608 = dma.vmem_to_hbm [thread:$0]  (%p2429_p4), %s1232_s19, 2048, %s2480_s7, [#allocation7], %s1907_s10, %s1907_s10, %s1908_s23  }
 0x45b   : > { %1871 = dma.done.wait (%p2429_p4), [#allocation7], 2048  }
 0x45c   : > { %1873 = vsyncadd (%p2429_p4), [#allocation7], 4294965248 }
 0x45d PF: > { %s22_s29 = sadd.s32 1, %s1896_s29   ;;  %s2496_s24 = smov %s1880_s25 }
 0x45e   : > { %p19_p1 = scmp.ge.s32.totalorder %s22_s29, 5   ;;  %s2497_s25 = smov %s1884_s26 }
 0x45f   : > { %s2498_s26 = smov %s2037_s20  ;;  %s2499_s27 = smov %s1892_s28 }
 0x460   : > { %s2500_s28 = smov %s2502_s14  ;;  %21 = sbr.rel (!%p19_p1) target bundleno = 6 (0x6), region = 108 }
 0x467   :  { %1247 = vsyncpa [#allocation6], 1 }
 0x468   :  { %1249 = vsyncpa [#allocation6 + $0x1], 1 }
 0x469   :  { %1250 = vsyncpa [#allocation9], 1 }
 0x46a   :  { %1251 = vsyncpa [#allocation7], 1 }
 0x46b   :  { %1253 = vsyncpa [#allocation7 + $0x1], 1 }

</bundles_post_ra>
